<compile_context>
chip_gen: v5e
topology: v5e:2x2
jax: 0.10.0
libtpu: 0.0.40
codegen_flags: <defaults>
</compile_context>

<pallas_src>
import functools

import jax
import jax.numpy as jnp
import numpy as np
from jax.experimental import pallas as pl
from jax.experimental.pallas import tpu as pltpu

LANE = 128
_EPS = 1e-5  # PyTorch BatchNorm2d default


# ----------------------------------------------------------------------------
# Fused Pallas kernel
# ----------------------------------------------------------------------------
def _block_kernel(xs_ref, w1_ref, w2_ref, wd_ref, sh_ref, o_ref, y1p_ref, *,
                  Ho, Wo, Kp, Coutp):
    M = Ho * Wo

    # ---- conv1 (3x3, stride 2, pad 1): 4 shift-fused matmuls over the packed
    # (2x2 sub-position, Cin) lane dim — no im2col, larger MXU K per dot. -------
    # s2d layout: xs[i, j, (a*2+c)*Cin + ch] == x_padded[2i+a, 2j+c, ch]
    win00 = xs_ref[0, pl.ds(0, Ho), pl.ds(0, Wo), :].reshape(M, Kp)   # bf16
    acc1 = jnp.dot(win00, w1_ref[0], preferred_element_type=jnp.float32)
    # fused 1x1 stride-2 downsample + folded BN residual (reuses the (0,0) window;
    # its weight occupies the sub-(1,1) lanes, all other rows are zero).
    res = jnp.dot(win00, wd_ref[...],
                  preferred_element_type=jnp.float32) + sh_ref[1:2, :]
    for g, (dh, dw) in ((1, (0, 1)), (2, (1, 0)), (3, (1, 1))):
        win = xs_ref[0, pl.ds(dh, Ho), pl.ds(dw, Wo), :].reshape(M, Kp)
        acc1 = acc1 + jnp.dot(win, w1_ref[g],
                              preferred_element_type=jnp.float32)

    # folded BN + ReLU; single cast to bf16 (conv2 MXU operand / halo scratch dtype)
    y1 = jnp.maximum(acc1 + sh_ref[0:1, :], 0.0).astype(jnp.bfloat16)
    # TODO(synk): nn.Dropout layers are identity in eval mode; training-mode RNG
    # dropout is not reproduced.

    # ---- conv2 halo buffer: zero ONLY the 4 halo strips (the interior is fully
    # overwritten every step) — no full-buffer zero fill on the vst slot. --------
    zrow = jnp.zeros((1, Wo + 2, Coutp), jnp.bfloat16)
    y1p_ref[pl.ds(0, 1), :, :] = zrow
    y1p_ref[pl.ds(Ho + 1, 1), :, :] = zrow
    zcol = jnp.zeros((Ho, 1, Coutp), jnp.bfloat16)
    y1p_ref[pl.ds(1, Ho), pl.ds(0, 1), :] = zcol
    y1p_ref[pl.ds(1, Ho), pl.ds(Wo + 1, 1), :] = zcol
    y1p_ref[pl.ds(1, Ho), pl.ds(1, Wo), :] = y1.reshape(Ho, Wo, Coutp)

    # ---- conv2 (3x3, stride 1, pad 1): 9 shifted matmuls on the bf16 halo buffer
    acc2 = jnp.zeros((M, Coutp), jnp.float32)
    for kh in range(3):
        for kw in range(3):
            win = y1p_ref[pl.ds(kh, Ho), pl.ds(kw, Wo), :].reshape(M, Coutp)
            acc2 = acc2 + jnp.dot(win, w2_ref[kh * 3 + kw],
                                  preferred_element_type=jnp.float32)

    # folded BN shift + residual, final ReLU; lane-dense store (Coutp % 128 == 0)
    out = jnp.maximum(acc2 + sh_ref[2:3, :] + res, 0.0)
    o_ref[0] = out.astype(o_ref.dtype)


# ----------------------------------------------------------------------------
# Parameter prep (pure JAX, one-time): fold BN, pack/pad weights, bf16 cast.
# ----------------------------------------------------------------------------
def _fold_scale_shift(gamma, beta, mean, var, conv_bias, eps=_EPS):
    scale = gamma / jnp.sqrt(var + eps)
    shift = beta + scale * (conv_bias - mean)
    return scale, shift


def _prep_conv1_shift_weights(w_oihw, scale, cin, kp, coutp):
    """[Cout,Cin,3,3] -> [4, kp, coutp] bf16: one fused matrix per (dh,dw) shift of
    the 2x2 space-to-depth grid; rows indexed by (sub=a*2+c, cin)."""
    cout = w_oihw.shape[0]
    w = jnp.transpose(w_oihw, (2, 3, 1, 0)) * scale[None, None, None, :]  # [3,3,Cin,Cout]
    groups = []
    for dh in range(2):
        for dw in range(2):
            wg = jnp.zeros((4, cin, cout), w.dtype)
            for a in range(2):
                for c in range(2):
                    kh, kw = 2 * dh + a, 2 * dw + c
                    if kh <= 2 and kw <= 2:
                        wg = wg.at[a * 2 + c].set(w[kh, kw])
            wg = wg.reshape(4 * cin, cout)
            wg = jnp.pad(wg, ((0, kp - 4 * cin), (0, coutp - cout)))
            groups.append(wg)
    return jnp.stack(groups).astype(jnp.bfloat16)


def _prep_conv2_weight(w_oihw, scale, cout, coutp):
    """[Cout,Cout,3,3] -> [9, coutp, coutp] bf16 with BN scale folded in."""
    w = jnp.transpose(w_oihw, (2, 3, 1, 0)).reshape(9, cout, cout) * scale[None, None, :]
    w = jnp.pad(w, ((0, 0), (0, coutp - cout), (0, coutp - cout)))
    return w.astype(jnp.bfloat16)


def _prep_down_weight(w_oihw, scale, cin, kp, coutp):
    """1x1 stride-2 conv weight placed into the sub-(1,1) lanes of the packed K dim."""
    cout = w_oihw.shape[0]
    w = w_oihw[:, :, 0, 0].T * scale[None, :]                  # [Cin, Cout]
    full = jnp.zeros((4 * cin, cout), w.dtype).at[3 * cin:4 * cin].set(w)
    full = jnp.pad(full, ((0, kp - 4 * cin), (0, coutp - cout)))
    return full.astype(jnp.bfloat16)


def _pad_vec(v, n_p):
    return jnp.pad(v.astype(jnp.float32), (0, n_p - v.shape[0]))


# ----------------------------------------------------------------------------
# Block forward (Pallas path)
# ----------------------------------------------------------------------------
def block_forward(x_nchw, p):
    N, Cin, H, W = x_nchw.shape
    Cout = p["w1"].shape[0]
    assert H % 2 == 0 and W % 2 == 0, "stride-2 block expects even spatial dims"
    Ho, Wo = H // 2, W // 2
    Hb, Wb = Ho + 1, Wo + 1
    Kp = pl.cdiv(4 * Cin, LANE) * LANE      # packed (sub, Cin) lane dim, lane-padded
    Coutp = pl.cdiv(Cout, LANE) * LANE      # lane-dense output channels

    # bf16 EARLY (halves the pad / s2d relayout bytes and the kernel input DMA),
    # NCHW -> NHWC, zero-pad spatial by 1, then 2x2 space-to-depth so the stride-2
    # taps become unit-stride in-kernel slices; channel pad once after packing.
    x = jnp.transpose(x_nchw.astype(jnp.bfloat16), (0, 2, 3, 1))
    x = jnp.pad(x, ((0, 0), (1, 1), (1, 1), (0, 0)))
    xs2d = (x.reshape(N, Hb, 2, Wb, 2, Cin)
             .transpose(0, 1, 3, 2, 4, 5)
             .reshape(N, Hb, Wb, 4 * Cin))
    xs2d = jnp.pad(xs2d, ((0, 0), (0, 0), (0, 0), (0, Kp - 4 * Cin)))

    s1, sh1 = _fold_scale_shift(p["g1"], p["be1"], p["m1"], p["v1"], p["b1"])
    s2, sh2 = _fold_scale_shift(p["g2"], p["be2"], p["m2"], p["v2"], p["b2"])
    sd, shd = _fold_scale_shift(p["d_gamma"], p["d_beta"], p["d_mean"],
                                p["d_var"], p["db"])

    w1g = _prep_conv1_shift_weights(p["w1"], s1, Cin, Kp, Coutp)   # [4, Kp, Coutp]
    w2 = _prep_conv2_weight(p["w2"], s2, Cout, Coutp)              # [9, Coutp, Coutp]
    wd = _prep_down_weight(p["dw"], sd, Cin, Kp, Coutp)            # [Kp, Coutp]
    shifts = jnp.stack([_pad_vec(sh1, Coutp),    # row 0: conv1 shift
                        _pad_vec(shd, Coutp),    # row 1: downsample shift
                        _pad_vec(sh2, Coutp)])   # row 2: conv2 shift

    kernel = functools.partial(_block_kernel, Ho=Ho, Wo=Wo, Kp=Kp, Coutp=Coutp)

    out = pl.pallas_call(
        kernel,
        out_shape=jax.ShapeDtypeStruct((N, Ho * Wo, Coutp), jnp.float32),
        grid_spec=pltpu.PrefetchScalarGridSpec(
            num_scalar_prefetch=0,
            grid=(N,),
            in_specs=[
                pl.BlockSpec((1, Hb, Wb, Kp), lambda b: (b, 0, 0, 0)),
                pl.BlockSpec((4, Kp, Coutp), lambda b: (0, 0, 0)),
                pl.BlockSpec((9, Coutp, Coutp), lambda b: (0, 0, 0)),
                pl.BlockSpec((Kp, Coutp), lambda b: (0, 0)),
                pl.BlockSpec((3, Coutp), lambda b: (0, 0)),
            ],
            out_specs=pl.BlockSpec((1, Ho * Wo, Coutp), lambda b: (b, 0, 0)),
            scratch_shapes=[pltpu.VMEM((Ho + 2, Wo + 2, Coutp), jnp.bfloat16)],
        ),
        compiler_params=pltpu.CompilerParams(
            dimension_semantics=("parallel",),      # megacore shards the batch axis
            vmem_limit_bytes=48 * 1024 * 1024,      # <= v7x 64 MiB physical; headroom on v5e/v6e
        ),
    )(xs2d, w1g, w2, wd, shifts)

    out = out.reshape(N, Ho, Wo, Coutp)[..., :Cout]    # strip channel padding
    # (final Dropout is identity in eval mode)
    return jnp.transpose(out, (0, 3, 1, 2))            # back to NCHW


block_forward_jit = jax.jit(block_forward)


# ----------------------------------------------------------------------------
# Pure-JAX f32 reference (mirrors the PyTorch module exactly, eval mode)
# ----------------------------------------------------------------------------
def ref_forward(x, p, eps=_EPS):
    def conv(x, w, b, stride, pad):
        y = jax.lax.conv_general_dilated(
            x, w, (stride, stride), [(pad, pad), (pad, pad)],
            dimension_numbers=("NCHW", "OIHW", "NCHW"))
        return y + b[None, :, None, None]

    def bn(y, g, be, m, v):
        return (y - m[None, :, None, None]) / jnp.sqrt(v[None, :, None, None] + eps) \
            * g[None, :, None, None] + be[None, :, None, None]

    res = bn(conv(x, p["dw"], p["db"], 2, 0),
             p["d_gamma"], p["d_beta"], p["d_mean"], p["d_var"])
    y = jnp.maximum(bn(conv(x, p["w1"], p["b1"], 2, 1),
                       p["g1"], p["be1"], p["m1"], p["v1"]), 0.0)
    y = bn(conv(y, p["w2"], p["b2"], 1, 1), p["g2"], p["be2"], p["m2"], p["v2"])
    return jnp.maximum(y + res, 0.0)


# ----------------------------------------------------------------------------
# Deterministic parameter initialization
# ----------------------------------------------------------------------------
def init_params(key, cin, cout):
    ks = jax.random.split(key, 16)

    def normal(k, shape, scale):
        return scale * jax.random.normal(k, shape, dtype=jnp.float32)

    return {
        # conv1: 3x3 s2 p1
        "w1": normal(ks[0], (cout, cin, 3, 3), 1.0 / np.sqrt(cin * 9)),
        "b1": normal(ks[1], (cout,), 0.05),
        "g1": 1.0 + 0.1 * jax.random.normal(ks[2], (cout,), dtype=jnp.float32),
        "be1": normal(ks[3], (cout,), 0.05),
        "m1": normal(ks[4], (cout,), 0.05),
        "v1": 0.5 + jax.random.uniform(ks[5], (cout,), dtype=jnp.float32),
        # conv2: 3x3 s1 p1
        "w2": normal(ks[6], (cout, cout, 3, 3), 1.0 / np.sqrt(cout * 9)),
        "b2": normal(ks[7], (cout,), 0.05),
        "g2": 1.0 + 0.1 * jax.random.normal(ks[8], (cout,), dtype=jnp.float32),
        "be2": normal(ks[9], (cout,), 0.05),
        "m2": normal(ks[10], (cout,), 0.05),
        "v2": 0.5 + jax.random.uniform(ks[11], (cout,), dtype=jnp.float32),
        # downsample: 1x1 s2
        "dw": normal(ks[12], (cout, cin, 1, 1), 1.0 / np.sqrt(cin)),
        "db": normal(ks[13], (cout,), 0.05),
        "d_gamma": 1.0 + 0.1 * jax.random.normal(ks[14], (cout,), dtype=jnp.float32),
        "d_beta": normal(ks[15], (cout,), 0.05),
        "d_mean": jnp.linspace(-0.1, 0.1, cout, dtype=jnp.float32),
        "d_var": jnp.linspace(0.8, 1.2, cout, dtype=jnp.float32),
    }


if __name__ == "__main__":
    key = jax.random.PRNGKey(0)
    k_x, k_p = jax.random.split(key)

    N, Cin, Cout, H, W = 2, 4, 8, 16, 16
    x = jax.random.normal(k_x, (N, Cin, H, W), dtype=jnp.float32)
    params = init_params(k_p, Cin, Cout)

    out = jax.block_until_ready(block_forward_jit(x, params))
    ref = jax.block_until_ready(ref_forward(x, params))

    assert out.shape == (N, Cout, H // 2, W // 2), out.shape
    # bf16 MXU operands -> compare against the exact f32 reference with bf16-level
    # tolerances.
    np.testing.assert_allclose(np.asarray(out), np.asarray(ref),
                               rtol=3e-2, atol=3e-2)

    print("KERNEL_OK")
</pallas_src>

<mosaic_0001>
module attributes {stable_mosaic.version = 11 : i64} {
  func.func @_block_kernel(%arg0: i32, %arg1: memref<1x9x9x128xbf16, #tpu.memory_space<vmem>>, %arg2: memref<4x128x128xbf16, #tpu.memory_space<vmem>>, %arg3: memref<9x128x128xbf16, #tpu.memory_space<vmem>>, %arg4: memref<128x128xbf16, #tpu.memory_space<vmem>>, %arg5: memref<3x128xf32, #tpu.memory_space<vmem>>, %arg6: memref<1x64x128xf32, #tpu.memory_space<vmem>>, %arg7: memref<10x10x128xbf16, #tpu.memory_space<vmem>>) attributes {dimension_semantics = [#tpu.dimension_semantics<parallel>], iteration_bounds = array<i64: 2>, scalar_prefetch = 0 : i64, scratch_operands = 1 : i64, tpu.core_type = #tpu.core_type<tc>, window_params = [{transform_indices = @transform_0, window_bounds = array<i64: 1, 9, 9, 128>}, {pipeline_mode = #tpu.pipeline_mode<synchronous>, transform_indices = @transform_1, window_bounds = array<i64: 4, 128, 128>}, {pipeline_mode = #tpu.pipeline_mode<synchronous>, transform_indices = @transform_2, window_bounds = array<i64: 9, 128, 128>}, {pipeline_mode = #tpu.pipeline_mode<synchronous>, transform_indices = @transform_3, window_bounds = array<i64: 128, 128>}, {pipeline_mode = #tpu.pipeline_mode<synchronous>, transform_indices = @transform_4, window_bounds = array<i64: 3, 128>}, {transform_indices = @transform_5, window_bounds = array<i64: 1, 64, 128>}]} {
    %c0 = arith.constant 0 : index
    %c0_0 = arith.constant 0 : index
    %c0_1 = arith.constant 0 : index
    %c0_2 = arith.constant 0 : index
    %0 = vector.load %arg1[%c0, %c0_0, %c0_1, %c0_2] : memref<1x9x9x128xbf16, #tpu.memory_space<vmem>>, vector<1x8x8x128xbf16>
    %1 = vector.shape_cast %0 : vector<1x8x8x128xbf16> to vector<8x8x128xbf16>
    %2 = vector.shape_cast %1 : vector<8x8x128xbf16> to vector<64x128xbf16>
    %c0_3 = arith.constant 0 : index
    %c0_4 = arith.constant 0 : index
    %c0_5 = arith.constant 0 : index
    %3 = vector.load %arg2[%c0_3, %c0_4, %c0_5] : memref<4x128x128xbf16, #tpu.memory_space<vmem>>, vector<1x128x128xbf16>
    %4 = vector.shape_cast %3 : vector<1x128x128xbf16> to vector<128x128xbf16>
    %cst = arith.constant dense<0.000000e+00> : vector<64x128xf32>
    %5 = tpu.matmul %2, %4, %cst {dimension_numbers = #tpu.dot_dimension_numbers<[1], [0], [0], [1], [0, 0, 1, 1], [], []>} : vector<64x128xbf16>, vector<128x128xbf16>, vector<64x128xf32> -> vector<64x128xf32>
    %c0_6 = arith.constant 0 : index
    %c0_7 = arith.constant 0 : index
    %6 = vector.load %arg4[%c0_6, %c0_7] : memref<128x128xbf16, #tpu.memory_space<vmem>>, vector<128x128xbf16>
    %cst_8 = arith.constant dense<0.000000e+00> : vector<64x128xf32>
    %7 = tpu.matmul %2, %6, %cst_8 {dimension_numbers = #tpu.dot_dimension_numbers<[1], [0], [0], [1], [0, 0, 1, 1], [], []>} : vector<64x128xbf16>, vector<128x128xbf16>, vector<64x128xf32> -> vector<64x128xf32>
    %c1 = arith.constant 1 : index
    %c0_9 = arith.constant 0 : index
    %8 = vector.load %arg5[%c1, %c0_9] : memref<3x128xf32, #tpu.memory_space<vmem>>, vector<1x128xf32>
    %9 = vector.broadcast %8 : vector<1x128xf32> to vector<64x128xf32>
    %10 = arith.addf %7, %9 : vector<64x128xf32>
    %c0_10 = arith.constant 0 : index
    %c0_11 = arith.constant 0 : index
    %c1_12 = arith.constant 1 : index
    %c0_13 = arith.constant 0 : index
    %11 = vector.load %arg1[%c0_10, %c0_11, %c1_12, %c0_13] : memref<1x9x9x128xbf16, #tpu.memory_space<vmem>>, vector<1x8x8x128xbf16>
    %12 = vector.shape_cast %11 : vector<1x8x8x128xbf16> to vector<8x8x128xbf16>
    %13 = vector.shape_cast %12 : vector<8x8x128xbf16> to vector<64x128xbf16>
    %c1_14 = arith.constant 1 : index
    %c0_15 = arith.constant 0 : index
    %c0_16 = arith.constant 0 : index
    %14 = vector.load %arg2[%c1_14, %c0_15, %c0_16] : memref<4x128x128xbf16, #tpu.memory_space<vmem>>, vector<1x128x128xbf16>
    %15 = vector.shape_cast %14 : vector<1x128x128xbf16> to vector<128x128xbf16>
    %cst_17 = arith.constant dense<0.000000e+00> : vector<64x128xf32>
    %16 = tpu.matmul %13, %15, %cst_17 {dimension_numbers = #tpu.dot_dimension_numbers<[1], [0], [0], [1], [0, 0, 1, 1], [], []>} : vector<64x128xbf16>, vector<128x128xbf16>, vector<64x128xf32> -> vector<64x128xf32>
    %17 = arith.addf %5, %16 : vector<64x128xf32>
    %c0_18 = arith.constant 0 : index
    %c1_19 = arith.constant 1 : index
    %c0_20 = arith.constant 0 : index
    %c0_21 = arith.constant 0 : index
    %18 = vector.load %arg1[%c0_18, %c1_19, %c0_20, %c0_21] : memref<1x9x9x128xbf16, #tpu.memory_space<vmem>>, vector<1x8x8x128xbf16>
    %19 = vector.shape_cast %18 : vector<1x8x8x128xbf16> to vector<8x8x128xbf16>
    %20 = vector.shape_cast %19 : vector<8x8x128xbf16> to vector<64x128xbf16>
    %c2 = arith.constant 2 : index
    %c0_22 = arith.constant 0 : index
    %c0_23 = arith.constant 0 : index
    %21 = vector.load %arg2[%c2, %c0_22, %c0_23] : memref<4x128x128xbf16, #tpu.memory_space<vmem>>, vector<1x128x128xbf16>
    %22 = vector.shape_cast %21 : vector<1x128x128xbf16> to vector<128x128xbf16>
    %cst_24 = arith.constant dense<0.000000e+00> : vector<64x128xf32>
    %23 = tpu.matmul %20, %22, %cst_24 {dimension_numbers = #tpu.dot_dimension_numbers<[1], [0], [0], [1], [0, 0, 1, 1], [], []>} : vector<64x128xbf16>, vector<128x128xbf16>, vector<64x128xf32> -> vector<64x128xf32>
    %24 = arith.addf %17, %23 : vector<64x128xf32>
    %c0_25 = arith.constant 0 : index
    %c1_26 = arith.constant 1 : index
    %c1_27 = arith.constant 1 : index
    %c0_28 = arith.constant 0 : index
    %25 = vector.load %arg1[%c0_25, %c1_26, %c1_27, %c0_28] : memref<1x9x9x128xbf16, #tpu.memory_space<vmem>>, vector<1x8x8x128xbf16>
    %26 = vector.shape_cast %25 : vector<1x8x8x128xbf16> to vector<8x8x128xbf16>
    %27 = vector.shape_cast %26 : vector<8x8x128xbf16> to vector<64x128xbf16>
    %c3 = arith.constant 3 : index
    %c0_29 = arith.constant 0 : index
    %c0_30 = arith.constant 0 : index
    %28 = vector.load %arg2[%c3, %c0_29, %c0_30] : memref<4x128x128xbf16, #tpu.memory_space<vmem>>, vector<1x128x128xbf16>
    %29 = vector.shape_cast %28 : vector<1x128x128xbf16> to vector<128x128xbf16>
    %cst_31 = arith.constant dense<0.000000e+00> : vector<64x128xf32>
    %30 = tpu.matmul %27, %29, %cst_31 {dimension_numbers = #tpu.dot_dimension_numbers<[1], [0], [0], [1], [0, 0, 1, 1], [], []>} : vector<64x128xbf16>, vector<128x128xbf16>, vector<64x128xf32> -> vector<64x128xf32>
    %31 = arith.addf %24, %30 : vector<64x128xf32>
    %c0_32 = arith.constant 0 : index
    %c0_33 = arith.constant 0 : index
    %32 = vector.load %arg5[%c0_32, %c0_33] : memref<3x128xf32, #tpu.memory_space<vmem>>, vector<1x128xf32>
    %33 = vector.broadcast %32 : vector<1x128xf32> to vector<64x128xf32>
    %34 = arith.addf %31, %33 : vector<64x128xf32>
    %cst_34 = arith.constant 0.000000e+00 : f32
    %35 = vector.broadcast %cst_34 : f32 to vector<64x128xf32>
    %36 = arith.maximumf %34, %35 : vector<64x128xf32>
    %37 = arith.truncf %36 : vector<64x128xf32> to vector<64x128xbf16>
    %cst_35 = arith.constant 0.000000e+00 : bf16
    %38 = vector.broadcast %cst_35 : bf16 to vector<1x10x128xbf16>
    %c0_36 = arith.constant 0 : index
    %c0_37 = arith.constant 0 : index
    %c0_38 = arith.constant 0 : index
    %39 = vector.load %arg7[%c0_36, %c0_37, %c0_38] : memref<10x10x128xbf16, #tpu.memory_space<vmem>>, vector<1x10x128xbf16>
    tpu.vector_store %arg7[%c0_36, %c0_37, %c0_38], %38 {strides = array<i32>} : memref<10x10x128xbf16, #tpu.memory_space<vmem>>, vector<1x10x128xbf16>,
    %c9 = arith.constant 9 : index
    %c0_39 = arith.constant 0 : index
    %c0_40 = arith.constant 0 : index
    %40 = vector.load %arg7[%c9, %c0_39, %c0_40] : memref<10x10x128xbf16, #tpu.memory_space<vmem>>, vector<1x10x128xbf16>
    tpu.vector_store %arg7[%c9, %c0_39, %c0_40], %38 {strides = array<i32>} : memref<10x10x128xbf16, #tpu.memory_space<vmem>>, vector<1x10x128xbf16>,
    %cst_41 = arith.constant 0.000000e+00 : bf16
    %41 = vector.broadcast %cst_41 : bf16 to vector<8x1x128xbf16>
    %c1_42 = arith.constant 1 : index
    %c0_43 = arith.constant 0 : index
    %c0_44 = arith.constant 0 : index
    %42 = vector.load %arg7[%c1_42, %c0_43, %c0_44] : memref<10x10x128xbf16, #tpu.memory_space<vmem>>, vector<8x1x128xbf16>
    tpu.vector_store %arg7[%c1_42, %c0_43, %c0_44], %41 {strides = array<i32>} : memref<10x10x128xbf16, #tpu.memory_space<vmem>>, vector<8x1x128xbf16>,
    %c1_45 = arith.constant 1 : index
    %c9_46 = arith.constant 9 : index
    %c0_47 = arith.constant 0 : index
    %43 = vector.load %arg7[%c1_45, %c9_46, %c0_47] : memref<10x10x128xbf16, #tpu.memory_space<vmem>>, vector<8x1x128xbf16>
    tpu.vector_store %arg7[%c1_45, %c9_46, %c0_47], %41 {strides = array<i32>} : memref<10x10x128xbf16, #tpu.memory_space<vmem>>, vector<8x1x128xbf16>,
    %44 = vector.shape_cast %37 : vector<64x128xbf16> to vector<8x8x128xbf16>
    %c1_48 = arith.constant 1 : index
    %c1_49 = arith.constant 1 : index
    %c0_50 = arith.constant 0 : index
    %45 = vector.load %arg7[%c1_48, %c1_49, %c0_50] : memref<10x10x128xbf16, #tpu.memory_space<vmem>>, vector<8x8x128xbf16>
    tpu.vector_store %arg7[%c1_48, %c1_49, %c0_50], %44 {strides = array<i32>} : memref<10x10x128xbf16, #tpu.memory_space<vmem>>, vector<8x8x128xbf16>,
    %cst_51 = arith.constant 0.000000e+00 : f32
    %46 = vector.broadcast %cst_51 : f32 to vector<64x128xf32>
    %c0_52 = arith.constant 0 : index
    %c0_53 = arith.constant 0 : index
    %c0_54 = arith.constant 0 : index
    %47 = vector.load %arg7[%c0_52, %c0_53, %c0_54] : memref<10x10x128xbf16, #tpu.memory_space<vmem>>, vector<8x8x128xbf16>
    %48 = vector.shape_cast %47 : vector<8x8x128xbf16> to vector<64x128xbf16>
    %c0_55 = arith.constant 0 : index
    %c0_56 = arith.constant 0 : index
    %c0_57 = arith.constant 0 : index
    %49 = vector.load %arg3[%c0_55, %c0_56, %c0_57] : memref<9x128x128xbf16, #tpu.memory_space<vmem>>, vector<1x128x128xbf16>
    %50 = vector.shape_cast %49 : vector<1x128x128xbf16> to vector<128x128xbf16>
    %cst_58 = arith.constant dense<0.000000e+00> : vector<64x128xf32>
    %51 = tpu.matmul %48, %50, %cst_58 {dimension_numbers = #tpu.dot_dimension_numbers<[1], [0], [0], [1], [0, 0, 1, 1], [], []>} : vector<64x128xbf16>, vector<128x128xbf16>, vector<64x128xf32> -> vector<64x128xf32>
    %52 = arith.addf %46, %51 : vector<64x128xf32>
    %c0_59 = arith.constant 0 : index
    %c1_60 = arith.constant 1 : index
    %c0_61 = arith.constant 0 : index
    %53 = vector.load %arg7[%c0_59, %c1_60, %c0_61] : memref<10x10x128xbf16, #tpu.memory_space<vmem>>, vector<8x8x128xbf16>
    %54 = vector.shape_cast %53 : vector<8x8x128xbf16> to vector<64x128xbf16>
    %c1_62 = arith.constant 1 : index
    %c0_63 = arith.constant 0 : index
    %c0_64 = arith.constant 0 : index
    %55 = vector.load %arg3[%c1_62, %c0_63, %c0_64] : memref<9x128x128xbf16, #tpu.memory_space<vmem>>, vector<1x128x128xbf16>
    %56 = vector.shape_cast %55 : vector<1x128x128xbf16> to vector<128x128xbf16>
    %cst_65 = arith.constant dense<0.000000e+00> : vector<64x128xf32>
    %57 = tpu.matmul %54, %56, %cst_65 {dimension_numbers = #tpu.dot_dimension_numbers<[1], [0], [0], [1], [0, 0, 1, 1], [], []>} : vector<64x128xbf16>, vector<128x128xbf16>, vector<64x128xf32> -> vector<64x128xf32>
    %58 = arith.addf %52, %57 : vector<64x128xf32>
    %c0_66 = arith.constant 0 : index
    %c2_67 = arith.constant 2 : index
    %c0_68 = arith.constant 0 : index
    %59 = vector.load %arg7[%c0_66, %c2_67, %c0_68] : memref<10x10x128xbf16, #tpu.memory_space<vmem>>, vector<8x8x128xbf16>
    %60 = vector.shape_cast %59 : vector<8x8x128xbf16> to vector<64x128xbf16>
    %c2_69 = arith.constant 2 : index
    %c0_70 = arith.constant 0 : index
    %c0_71 = arith.constant 0 : index
    %61 = vector.load %arg3[%c2_69, %c0_70, %c0_71] : memref<9x128x128xbf16, #tpu.memory_space<vmem>>, vector<1x128x128xbf16>
    %62 = vector.shape_cast %61 : vector<1x128x128xbf16> to vector<128x128xbf16>
    %cst_72 = arith.constant dense<0.000000e+00> : vector<64x128xf32>
    %63 = tpu.matmul %60, %62, %cst_72 {dimension_numbers = #tpu.dot_dimension_numbers<[1], [0], [0], [1], [0, 0, 1, 1], [], []>} : vector<64x128xbf16>, vector<128x128xbf16>, vector<64x128xf32> -> vector<64x128xf32>
    %64 = arith.addf %58, %63 : vector<64x128xf32>
    %c1_73 = arith.constant 1 : index
    %c0_74 = arith.constant 0 : index
    %c0_75 = arith.constant 0 : index
    %65 = vector.load %arg7[%c1_73, %c0_74, %c0_75] : memref<10x10x128xbf16, #tpu.memory_space<vmem>>, vector<8x8x128xbf16>
    %66 = vector.shape_cast %65 : vector<8x8x128xbf16> to vector<64x128xbf16>
    %c3_76 = arith.constant 3 : index
    %c0_77 = arith.constant 0 : index
    %c0_78 = arith.constant 0 : index
    %67 = vector.load %arg3[%c3_76, %c0_77, %c0_78] : memref<9x128x128xbf16, #tpu.memory_space<vmem>>, vector<1x128x128xbf16>
    %68 = vector.shape_cast %67 : vector<1x128x128xbf16> to vector<128x128xbf16>
    %cst_79 = arith.constant dense<0.000000e+00> : vector<64x128xf32>
    %69 = tpu.matmul %66, %68, %cst_79 {dimension_numbers = #tpu.dot_dimension_numbers<[1], [0], [0], [1], [0, 0, 1, 1], [], []>} : vector<64x128xbf16>, vector<128x128xbf16>, vector<64x128xf32> -> vector<64x128xf32>
    %70 = arith.addf %64, %69 : vector<64x128xf32>
    %c1_80 = arith.constant 1 : index
    %c1_81 = arith.constant 1 : index
    %c0_82 = arith.constant 0 : index
    %71 = vector.load %arg7[%c1_80, %c1_81, %c0_82] : memref<10x10x128xbf16, #tpu.memory_space<vmem>>, vector<8x8x128xbf16>
    %72 = vector.shape_cast %71 : vector<8x8x128xbf16> to vector<64x128xbf16>
    %c4 = arith.constant 4 : index
    %c0_83 = arith.constant 0 : index
    %c0_84 = arith.constant 0 : index
    %73 = vector.load %arg3[%c4, %c0_83, %c0_84] : memref<9x128x128xbf16, #tpu.memory_space<vmem>>, vector<1x128x128xbf16>
    %74 = vector.shape_cast %73 : vector<1x128x128xbf16> to vector<128x128xbf16>
    %cst_85 = arith.constant dense<0.000000e+00> : vector<64x128xf32>
    %75 = tpu.matmul %72, %74, %cst_85 {dimension_numbers = #tpu.dot_dimension_numbers<[1], [0], [0], [1], [0, 0, 1, 1], [], []>} : vector<64x128xbf16>, vector<128x128xbf16>, vector<64x128xf32> -> vector<64x128xf32>
    %76 = arith.addf %70, %75 : vector<64x128xf32>
    %c1_86 = arith.constant 1 : index
    %c2_87 = arith.constant 2 : index
    %c0_88 = arith.constant 0 : index
    %77 = vector.load %arg7[%c1_86, %c2_87, %c0_88] : memref<10x10x128xbf16, #tpu.memory_space<vmem>>, vector<8x8x128xbf16>
    %78 = vector.shape_cast %77 : vector<8x8x128xbf16> to vector<64x128xbf16>
    %c5 = arith.constant 5 : index
    %c0_89 = arith.constant 0 : index
    %c0_90 = arith.constant 0 : index
    %79 = vector.load %arg3[%c5, %c0_89, %c0_90] : memref<9x128x128xbf16, #tpu.memory_space<vmem>>, vector<1x128x128xbf16>
    %80 = vector.shape_cast %79 : vector<1x128x128xbf16> to vector<128x128xbf16>
    %cst_91 = arith.constant dense<0.000000e+00> : vector<64x128xf32>
    %81 = tpu.matmul %78, %80, %cst_91 {dimension_numbers = #tpu.dot_dimension_numbers<[1], [0], [0], [1], [0, 0, 1, 1], [], []>} : vector<64x128xbf16>, vector<128x128xbf16>, vector<64x128xf32> -> vector<64x128xf32>
    %82 = arith.addf %76, %81 : vector<64x128xf32>
    %c2_92 = arith.constant 2 : index
    %c0_93 = arith.constant 0 : index
    %c0_94 = arith.constant 0 : index
    %83 = vector.load %arg7[%c2_92, %c0_93, %c0_94] : memref<10x10x128xbf16, #tpu.memory_space<vmem>>, vector<8x8x128xbf16>
    %84 = vector.shape_cast %83 : vector<8x8x128xbf16> to vector<64x128xbf16>
    %c6 = arith.constant 6 : index
    %c0_95 = arith.constant 0 : index
    %c0_96 = arith.constant 0 : index
    %85 = vector.load %arg3[%c6, %c0_95, %c0_96] : memref<9x128x128xbf16, #tpu.memory_space<vmem>>, vector<1x128x128xbf16>
    %86 = vector.shape_cast %85 : vector<1x128x128xbf16> to vector<128x128xbf16>
    %cst_97 = arith.constant dense<0.000000e+00> : vector<64x128xf32>
    %87 = tpu.matmul %84, %86, %cst_97 {dimension_numbers = #tpu.dot_dimension_numbers<[1], [0], [0], [1], [0, 0, 1, 1], [], []>} : vector<64x128xbf16>, vector<128x128xbf16>, vector<64x128xf32> -> vector<64x128xf32>
    %88 = arith.addf %82, %87 : vector<64x128xf32>
    %c2_98 = arith.constant 2 : index
    %c1_99 = arith.constant 1 : index
    %c0_100 = arith.constant 0 : index
    %89 = vector.load %arg7[%c2_98, %c1_99, %c0_100] : memref<10x10x128xbf16, #tpu.memory_space<vmem>>, vector<8x8x128xbf16>
    %90 = vector.shape_cast %89 : vector<8x8x128xbf16> to vector<64x128xbf16>
    %c7 = arith.constant 7 : index
    %c0_101 = arith.constant 0 : index
    %c0_102 = arith.constant 0 : index
    %91 = vector.load %arg3[%c7, %c0_101, %c0_102] : memref<9x128x128xbf16, #tpu.memory_space<vmem>>, vector<1x128x128xbf16>
    %92 = vector.shape_cast %91 : vector<1x128x128xbf16> to vector<128x128xbf16>
    %cst_103 = arith.constant dense<0.000000e+00> : vector<64x128xf32>
    %93 = tpu.matmul %90, %92, %cst_103 {dimension_numbers = #tpu.dot_dimension_numbers<[1], [0], [0], [1], [0, 0, 1, 1], [], []>} : vector<64x128xbf16>, vector<128x128xbf16>, vector<64x128xf32> -> vector<64x128xf32>
    %94 = arith.addf %88, %93 : vector<64x128xf32>
    %c2_104 = arith.constant 2 : index
    %c2_105 = arith.constant 2 : index
    %c0_106 = arith.constant 0 : index
    %95 = vector.load %arg7[%c2_104, %c2_105, %c0_106] : memref<10x10x128xbf16, #tpu.memory_space<vmem>>, vector<8x8x128xbf16>
    %96 = vector.shape_cast %95 : vector<8x8x128xbf16> to vector<64x128xbf16>
    %c8 = arith.constant 8 : index
    %c0_107 = arith.constant 0 : index
    %c0_108 = arith.constant 0 : index
    %97 = vector.load %arg3[%c8, %c0_107, %c0_108] : memref<9x128x128xbf16, #tpu.memory_space<vmem>>, vector<1x128x128xbf16>
    %98 = vector.shape_cast %97 : vector<1x128x128xbf16> to vector<128x128xbf16>
    %cst_109 = arith.constant dense<0.000000e+00> : vector<64x128xf32>
    %99 = tpu.matmul %96, %98, %cst_109 {dimension_numbers = #tpu.dot_dimension_numbers<[1], [0], [0], [1], [0, 0, 1, 1], [], []>} : vector<64x128xbf16>, vector<128x128xbf16>, vector<64x128xf32> -> vector<64x128xf32>
    %100 = arith.addf %94, %99 : vector<64x128xf32>
    %c2_110 = arith.constant 2 : index
    %c0_111 = arith.constant 0 : index
    %101 = vector.load %arg5[%c2_110, %c0_111] : memref<3x128xf32, #tpu.memory_space<vmem>>, vector<1x128xf32>
    %102 = vector.broadcast %101 : vector<1x128xf32> to vector<64x128xf32>
    %103 = arith.addf %100, %102 : vector<64x128xf32>
    %104 = arith.addf %103, %10 : vector<64x128xf32>
    %cst_112 = arith.constant 0.000000e+00 : f32
    %105 = vector.broadcast %cst_112 : f32 to vector<64x128xf32>
    %106 = arith.maximumf %104, %105 : vector<64x128xf32>
    %c0_113 = arith.constant 0 : index
    %c0_114 = arith.constant 0 : index
    %c0_115 = arith.constant 0 : index
    %107 = vector.load %arg6[%c0_113, %c0_114, %c0_115] : memref<1x64x128xf32, #tpu.memory_space<vmem>>, vector<1x64x128xf32>
    %108 = vector.shape_cast %107 : vector<1x64x128xf32> to vector<64x128xf32>
    %109 = vector.shape_cast %106 : vector<64x128xf32> to vector<1x64x128xf32>
    tpu.vector_store %arg6[%c0_113, %c0_114, %c0_115], %109 {strides = array<i32>} : memref<1x64x128xf32, #tpu.memory_space<vmem>>, vector<1x64x128xf32>,
    return
  }
  func.func @transform_0(%arg0: i32) -> (i32, i32, i32, i32) {
    %c0_i32 = arith.constant 0 : i32
    %c0_i32_0 = arith.constant 0 : i32
    %c0_i32_1 = arith.constant 0 : i32
    %c0_i32_2 = arith.constant 0 : i32
    return %arg0, %c0_i32, %c0_i32_0, %c0_i32_1 : i32, i32, i32, i32
  }
  func.func @transform_1(%arg0: i32) -> (i32, i32, i32) {
    %c0_i32 = arith.constant 0 : i32
    %c0_i32_0 = arith.constant 0 : i32
    %c0_i32_1 = arith.constant 0 : i32
    %c0_i32_2 = arith.constant 0 : i32
    return %c0_i32, %c0_i32_0, %c0_i32_1 : i32, i32, i32
  }
  func.func @transform_2(%arg0: i32) -> (i32, i32, i32) {
    %c0_i32 = arith.constant 0 : i32
    %c0_i32_0 = arith.constant 0 : i32
    %c0_i32_1 = arith.constant 0 : i32
    %c0_i32_2 = arith.constant 0 : i32
    return %c0_i32, %c0_i32_0, %c0_i32_1 : i32, i32, i32
  }
  func.func @transform_3(%arg0: i32) -> (i32, i32) {
    %c0_i32 = arith.constant 0 : i32
    %c0_i32_0 = arith.constant 0 : i32
    %c0_i32_1 = arith.constant 0 : i32
    return %c0_i32, %c0_i32_0 : i32, i32
  }
  func.func @transform_4(%arg0: i32) -> (i32, i32) {
    %c0_i32 = arith.constant 0 : i32
    %c0_i32_0 = arith.constant 0 : i32
    %c0_i32_1 = arith.constant 0 : i32
    return %c0_i32, %c0_i32_0 : i32, i32
  }
  func.func @transform_5(%arg0: i32) -> (i32, i32, i32) {
    %c0_i32 = arith.constant 0 : i32
    %c0_i32_0 = arith.constant 0 : i32
    %c0_i32_1 = arith.constant 0 : i32
    return %arg0, %c0_i32, %c0_i32_0 : i32, i32, i32
  }
}

</mosaic_0001>

<bundles_post_ra>
// kernel: block_forward.1
= control target key start
LH: loop header
LB: loop body
LE: loop exit
PB: predicated region body
PF: predicated region fallthrough
CT: control target
= control target key end

     0   :  { %s3976_s18 = smov 0   ;;  %s4886_s0 = inlined_call_operand.vmem [shape: bf16[2,9,9,128], index: 0, kind: input, shape index: {}]   ;;  %s4887_s1 = inlined_call_operand.vmem [shape: bf16[4,128,128], index: 1, kind: input, shape index: {}]   ;;  %s4888_s2 = inlined_call_operand.vmem [shape: bf16[9,128,128], index: 2, kind: input, shape index: {}]   ;;  %s4889_s3 = inlined_call_operand.vmem [shape: bf16[128,128], index: 3, kind: input, shape index: {}]   ;;  %s4890_s4 = inlined_call_operand.vmem [shape: f32[3,128], index: 4, kind: input, shape index: {}]   ;;  %s4891_s5 = inlined_call_operand.vmem [shape: f32[2,64,128], index: 5, kind: output, shape index: {}]  }
   0x1 LB: > { %s3013_s19 = sadd.s32 4294967295, %s3943_s18   ;;  %p3017_p0 = scmp.ge.s32.totalorder %s3943_s18, 1  ;;  %s3943_s18 = sphi %s3976_s18, %s15_s18  }
   0x2   : > { %p187_p1 = scmp.lt.s32.totalorder %s3943_s18, 3 }
   0x4   : > { %p188_p2 = pnand %p3017_p0, %p187_p1 }
   0x6   : > { %191 = sbr.rel (%p188_p2) target bundleno = 572 (0x23c), region = 40 }
   0xb   : > { %v3795_v0 = vld [vmem:[%s4889_s3 + $0x38] sm:$0xff]  ;;  %p215_p3 = scmp.lt.s32.totalorder %s3013_s19, 1  ;;  %v3794_v2 = vld [vmem:[%s4889_s3 + $0x30] sm:$0xff]  ;;  %v3793_v4 = vld [vmem:[%s4889_s3 + $0x28] sm:$0xff]  ;;  %vm385_vm0 = vsmask.f32 3328 }
   0xc   : > { %v3803_v1 = vld [vmem:[%s4887_s1 + $0x78] sm:$0xff]  ;;  %3908 = vmatpush.bf16.msra.mxu2 %v3795_v0  ;;  %v3802_v3 = vld [vmem:[%s4887_s1 + $0x70] sm:$0xff]  ;;  %340 = vmatpush.bf16.msra.mxu0 %v3795_v0  ;;  %v3801_v5 = vld [vmem:[%s4887_s1 + $0x68] sm:$0xff]  ;;  %vm386_vm1 = vsmask.f32 7440  ;;  %vm1100_vm3 = vcmask 1040384  }
   0xd   : > { %3916 = vmatpush.bf16.msra.mxu3 %v3803_v1  ;;  %s4905_s19 = smov (!%p215_p3, %s3013_s19), 1  ;;  %581 = vmatpush.bf16.msra.mxu1 %v3803_v1  ;;  %v3792_v11 = vld [vmem:[%s4889_s3 + $0x20] sm:$0xff]  ;;  %v3791_v22 = vld [vmem:[%s4889_s3 + $0x18] sm:$0xff]  ;;  %v3790_v31 = vld [vmem:[%s4889_s3 + $0x10] sm:$0xff]  ;;  %vm1101_vm4 = vsmask.f32 256 }
   0xe   : > { %s3924_s28 = smul.u32 72, %s4905_s19  ;;  %v3800_v12 = vld [vmem:[%s4887_s1 + $0x60] sm:$0xff]  ;;  %v3799_v23 = vld [vmem:[%s4887_s1 + $0x58] sm:$0xff]  ;;  %v3798_v32 = vld [vmem:[%s4887_s1 + $0x50] sm:$0xff]  ;;  %vm1127_vm5 = vsmask.f32 7938 }
   0xf   : > { %vm4034_vm2 = vmor %vm385_vm0, %vm386_vm1  ;;  %v3789_v49 = vld [vmem:[%s4889_s3 + $0x8] sm:$0xff]  ;;  %v3788_v60 = vld [vmem:[%s4889_s3] sm:$0xff]  ;;  %vm1233_vm8 = vcmask 1043456   ;;  %vm1662_vm10 = vcmask 1042432   ;;  %vm1663_vm11 = vcmask 1046532   ;;  %s3775_s26 = sshll.u32 %s4905_s19, 6 }
  0x10   : > { %3909 = vmatpush.bf16.msra.mxu2 %v3794_v2  ;;  %s4008_s10 = scalar_lea.vmem %s4886_s0, %s3924_s28  ;;  %341 = vmatpush.bf16.msra.mxu0 %v3794_v2  ;;  %v3797_v50 = vld [vmem:[%s4887_s1 + $0x48] sm:$0xff]  ;;  %vm4245_vm6 = vmand %vm1100_vm3, %vm1101_vm4  ;;  %s4832_s29 = scalar_lea.vmem %s4891_s5, %s3775_s26 }
  0x11   : > { %3917 = vmatpush.bf16.msra.mxu3 %v3802_v3  ;;  %v377_v6 = vld [vmem:[%s4008_s10 + $0x20] sm:$0xf]  ;;  %582 = vmatpush.bf16.msra.mxu1 %v3802_v3  ;;  %v379_v7 = vld [vmem:[%s4008_s10 + $0x28] sm:$0xf]  ;;  %v378_v13 = vld [vmem:[%s4008_s10 + $0x24] sm:$0x1] }
  0x12   : > { %v445_v8 = vshrl.u32 %v377_v6, 16  ;;  %v448_v9 = vshll.u32 %v377_v6, 16  ;;  %v459_v10 = vshrl.u32 %v379_v7, 16  ;;  %v462_v14 = vshll.u32 %v379_v7, 16  ;;  %v380_v15 = vld [vmem:[%s4008_s10 + $0x2c] sm:$0x1]  ;;  %vm4252_vm7 = vmand %vm1100_vm3, %vm1127_vm5 }
  0x13   : > { %v454_v21 = vshll.u32 %v378_v13, 16  ;;  %v468_v25 = vshll.u32 %v380_v15, 16  ;;  %v381_v26 = vld [vmem:[%s4008_s10 + $0x30] sm:$0xf]  ;;  %v383_v27 = vld [vmem:[%s4008_s10 + $0x38] sm:$0xf]  ;;  %vm4372_vm9 = vmand %vm1233_vm8, %vm1127_vm5 }
  0x14   : > { %3910 = vmatpush.bf16.msra.mxu2 %v3793_v4  ;;  %342 = vmatpush.bf16.msra.mxu0 %v3793_v4  ;;  %v447_v16 = vrot.slane %v445_v8, 4  ;;  %v450_v17 = vrot.slane %v448_v9, 5  ;;  %v461_v18 = vrot.slane %v459_v10, 4  ;;  %v464_v19 = vrot.slane %v462_v14, 5  ;;  %v369_v38 = vld [vmem:[%s4008_s10] sm:$0xf]  ;;  %vm4387_vm12 = vmor %vm1662_vm10, %vm1663_vm11 }
  0x15   : > { %3918 = vmatpush.bf16.msra.mxu3 %v3801_v5  ;;  %583 = vmatpush.bf16.msra.mxu1 %v3801_v5  ;;  %v456_v29 = vrot.slane %v454_v21, 5  ;;  %v473_v30 = vshrl.u32 %v381_v26, 16  ;;  %v470_v35 = vrot.slane %v468_v25, 5  ;;  %v476_v36 = vshll.u32 %v381_v26, 16  ;;  %v371_v39 = vld [vmem:[%s4008_s10 + $0x8] sm:$0xf] }
  0x16   : > { %v451_v20 = vor.u32 %v450_v17, %v447_v16  ;;  %v465_v24 = vor.u32 %v464_v19, %v461_v18  ;;  %v487_v37 = vshrl.u32 %v383_v27, 16  ;;  %v490_v40 = vshll.u32 %v383_v27, 16  ;;  %v370_v46 = vld [vmem:[%s4008_s10 + $0x4] sm:$0x1]  ;;  %v372_v47 = vld [vmem:[%s4008_s10 + $0xc] sm:$0x1] }
  0x17   : > { %v389_v41 = vshrl.u32 %v369_v38, 16  ;;  %v392_v42 = vshll.u32 %v369_v38, 16  ;;  %v403_v43 = vshrl.u32 %v371_v39, 16  ;;  %v4042_v45 = vrot.slane %v473_v30, 4  ;;  %v3031_v55 = vld [vmem:[%s4008_s10 + $0x20] sm:$0xf] }
  0x18   : > { %3911 = vmatpush.bf16.msra.mxu2 %v3792_v11  ;;  %343 = vmatpush.bf16.msra.mxu0 %v3792_v11  ;;  %v452_v28 = vrot.slane %v451_v20, 4  ;;  %v466_v34 = vrot.slane %v465_v24, 4  ;;  %v406_v48 = vshll.u32 %v371_v39, 16  ;;  %v398_v54 = vshll.u32 %v370_v46, 16  ;;  %v3778_v61 = vld [vmem:[%s4008_s10 + $0x24] sm:$0xf0] }
  0x19   : > { %3919 = vmatpush.bf16.msra.mxu3 %v3800_v12  ;;  %584 = vmatpush.bf16.msra.mxu1 %v3800_v12  ;;  %v391_v52 = vrot.slane %v389_v41, 4  ;;  %v394_v53 = vrot.slane %v392_v42, 5  ;;  %v478_v56 = vrot.slane %v476_v36, 5  ;;  %v405_v57 = vrot.slane %v403_v43, 4  ;;  %v382_v3 = vld [vmem:[%s4008_s10 + $0x34] sm:$0x1] }
  0x1a   : > { %v457_v44 = vsel %vm4034_vm2, %v452_v28, %v456_v29  ;;  %v471_v51 = vsel %vm4034_vm2, %v466_v34, %v470_v35  ;;  %v408_v58 = vrot.slane %v406_v48, 5  ;;  %v412_v59 = vshll.u32 %v372_v47, 16  ;;  %v384_v4 = vld [vmem:[%s4008_s10 + $0x3c] sm:$0x1]  ;;  %v3796_v8 = vld [vmem:[%s4887_s1 + $0x40] sm:$0xff]  ;;  %v3786_v27 = vld [vmem:[%s4887_s1 + $0x30] sm:$0xff] }
  0x1b   : > { %v521_v62 = vunpack.c.l.b16 %v457_v44  ;;  %v489_v63 = vrot.slane %v487_v37, 4  ;;  %v395_v0 = vor.u32 %v394_v53, %v391_v52  ;;  %v400_v1 = vrot.slane %v398_v54, 5  ;;  %v3023_v9 = vld [vmem:[%s4008_s10] sm:$0xf]  ;;  %v3787_v12 = vld [vmem:[%s4887_s1 + $0x38] sm:$0xff]  ;;  %v3814_v28 = vld [vmem:[%s4887_s1 + $0xb0] sm:$0xff] }
  0x1c   : > { %3912 = vmatpush.bf16.msra.mxu2 %v3791_v22  ;;  %344 = vmatpush.bf16.msra.mxu0 %v3791_v22  ;;  %v522_v2 = vunpack.c.l.b16 %v471_v51  ;;  %v492_v5 = vrot.slane %v490_v40, 5  ;;  %v409_v6 = vor.u32 %v408_v58, %v405_v57  ;;  %v414_v7 = vrot.slane %v412_v59, 5  ;;  %v3776_v13 = vld [vmem:[%s4008_s10 + $0x4] sm:$0xf0]  ;;  %v3815_v15 = vld [vmem:[%s4887_s1 + $0xb8] sm:$0xff]  ;;  %v3822_v29 = vld [vmem:[%s4887_s1 + $0xf0] sm:$0xff] }
  0x1d   : > { %3920 = vmatpush.bf16.msra.mxu3 %v3799_v23  ;;  %585 = vmatpush.bf16.msra.mxu1 %v3799_v23  ;;  %v396_v10 = vrot.slane %v395_v0, 4  ;;  %v4065_v11 = vor.u32 %v3778_v61, %v3031_v55  ;;  %v3823_v16 = vld [vmem:[%s4887_s1 + $0xf8] sm:$0xff]  ;;  %v479_v17 = vor.u32 %v478_v56, %v4042_v45  ;;  %v482_v18 = vshll.u32 %v382_v3, 16  ;;  %v373_v36 = vld [vmem:[%s4008_s10 + $0x10] sm:$0xf]  ;;  %v3785_v42 = vld [vmem:[%s4887_s1 + $0x28] sm:$0xff] }
  0x1e   : > { %v410_v14 = vrot.slane %v409_v6, 4  ;;  %v496_v19 = vshll.u32 %v384_v4, 16  ;;  %v527_v21 = vpack.c.b16 %v522_v2, %v521_v62  ;;  %v493_v22 = vor.u32 %v492_v5, %v489_v63  ;;  %v375_v37 = vld [vmem:[%s4008_s10 + $0x18] sm:$0xf]  ;;  %v374_v38 = vld [vmem:[%s4008_s10 + $0x14] sm:$0x1] }
  0x1f   : > { %v401_v20 = vsel %vm4034_vm2, %v396_v10, %v400_v1  ;;  %v4082_v25 = vor.u32 %v3776_v13, %v3023_v9  ;;  %v484_v30 = vrot.slane %v482_v18, 5  ;;  %v376_v39 = vld [vmem:[%s4008_s10 + $0x1c] sm:$0x1]  ;;  %v417_v40 = vshrl.u32 %v373_v36, 16  ;;  %v3813_v43 = vld [vmem:[%s4887_s1 + $0xa8] sm:$0xff]  ;;  %v3784_v59 = vld [vmem:[%s4887_s1 + $0x20] sm:$0xff] }
  0x20   : > { %3913 = vmatpush.bf16.msra.mxu2 %v3790_v31  ;;  %345 = vmatpush.bf16.msra.mxu0 %v3790_v31  ;;  %v415_v23 = vsel %vm4034_vm2, %v410_v14, %v414_v7  ;;  %v517_v24 = vunpack.c.l.b16 %v401_v20  ;;  %v498_v31 = vrot.slane %v496_v19, 5  ;;  %v494_v34 = vrot.slane %v493_v22, 4  ;;  %v3221_v44 = vld [vmem:[%s4008_s10 + $0x8] sm:$0xf]  ;;  %v3223_v48 = vld [vmem:[%s4008_s10 + $0x10] sm:$0xf] }
  0x21   : > { %3921 = vmatpush.bf16.msra.mxu3 %v3798_v32  ;;  %586 = vmatpush.bf16.msra.mxu1 %v3798_v32  ;;  %v518_v26 = vunpack.c.l.b16 %v415_v23  ;;  %v480_v32 = vrot.slane %v479_v17, 4  ;;  %v420_v41 = vshll.u32 %v373_v36, 16  ;;  %v426_v45 = vshll.u32 %v374_v38, 16  ;;  %v3821_v47 = vld [vmem:[%s4887_s1 + $0xe8] sm:$0xff]  ;;  %v3812_v0 = vld [vmem:[%s4887_s1 + $0xa0] sm:$0xff]  ;;  %v3783_v9 = vld [vmem:[%s4887_s1 + $0x18] sm:$0xff] }
  0x22   : > { %v431_v46 = vshrl.u32 %v375_v37, 16  ;;  %v434_v51 = vshll.u32 %v375_v37, 16  ;;  %v440_v54 = vshll.u32 %v376_v39, 16  ;;  %v499_v55 = vsel %vm4034_vm2, %v494_v34, %v498_v31  ;;  %v3820_v1 = vld [vmem:[%s4887_s1 + $0xe0] sm:$0xff]  ;;  %v3035_v5 = vld [vmem:[%s4008_s10 + $0x30] sm:$0xf] }
  0x23   : > { %v525_v35 = vpack.c.b16 %v518_v26, %v517_v24  ;;  %v485_v52 = vsel %vm4034_vm2, %v480_v32, %v484_v30  ;;  %v428_v57 = vrot.slane %v426_v45, 5  ;;  %v842_v61 = vshll.u32 %v3221_v44, 16  ;;  %v3779_v6 = vld [vmem:[%s4008_s10 + $0x34] sm:$0xf0]  ;;  %v3224_v22 = vld [vmem:[%s4008_s10 + $0x14] sm:$0x1] }
  0x24   : > { %3914 = vmatpush.bf16.msra.mxu2 %v3789_v49  ;;  %346 = vmatpush.bf16.msra.mxu0 %v3789_v49  ;;  %v419_v49 = vrot.slane %v417_v40, 4  ;;  %v433_v53 = vrot.slane %v431_v46, 4  ;;  %v436_v58 = vrot.slane %v434_v51, 5  ;;  %v853_v62 = vshrl.u32 %v3223_v48, 16  ;;  %v3811_v10 = vld [vmem:[%s4887_s1 + $0x98] sm:$0xff]  ;;  %v3782_v30 = vld [vmem:[%s4887_s1 + $0x10] sm:$0xff] }
  0x25   : > { %3922 = vmatpush.bf16.msra.mxu3 %v3797_v50  ;;  %587 = vmatpush.bf16.msra.mxu1 %v3797_v50  ;;  %v422_v50 = vrot.slane %v420_v41, 5  ;;  %v856_v63 = vshll.u32 %v3223_v48, 16  ;;  %v442_v4 = vrot.slane %v440_v54, 5  ;;  %v523_v7 = vunpack.c.l.b16 %v485_v52  ;;  %v3819_v20 = vld [vmem:[%s4887_s1 + $0xd8] sm:$0xff]  ;;  %v3810_v36 = vld [vmem:[%s4887_s1 + $0x90] sm:$0xff]  ;;  %v3781_v41 = vld [vmem:[%s4887_s1 + $0x8] sm:$0xff] }
  0x26   : > { %v437_v3 = vor.u32 %v436_v58, %v433_v53  ;;  %v844_v17 = vrot.slane %v842_v61, 5  ;;  %v855_v18 = vrot.slane %v853_v62, 4  ;;  %v4142_v24 = vor.u32 %v3779_v6, %v3035_v5  ;;  %v3818_v37 = vld [vmem:[%s4887_s1 + $0xd0] sm:$0xff]  ;;  %v3225_v39 = vld [vmem:[%s4008_s10 + $0x18] sm:$0xf]  ;;  %v3809_v46 = vld [vmem:[%s4887_s1 + $0x88] sm:$0xff] }
  0x27   : > { %v423_v56 = vor.u32 %v422_v50, %v419_v49  ;;  %v858_v19 = vrot.slane %v856_v63, 5  ;;  %v3227_v40 = vld [vmem:[%s4008_s10 + $0x20] sm:$0xf]  ;;  %v867_v48 = vshrl.u32 %v3225_v39, 16  ;;  %v870_v49 = vshll.u32 %v3225_v39, 16 }
  0x28   : > { %3915 = vmatpush.bf16.msra.mxu2 %v3788_v60  ;;  %347 = vmatpush.bf16.msra.mxu0 %v3788_v60  ;;  %v839_v60 = vshrl.u32 %v3221_v44, 16  ;;  %v438_v14 = vrot.slane %v437_v3, 4  ;;  %v881_v50 = vshrl.u32 %v3227_v40, 16  ;;  %v884_v51 = vshll.u32 %v3227_v40, 16  ;;  %v3780_v52 = vld [vmem:[%s4887_s1] sm:$0xff] }
  0x29   : > { %3923 = vmatpush.bf16.msra.mxu3 %v3796_v8  ;;  %588 = vmatpush.bf16.msra.mxu1 %v3796_v8  ;;  %v424_v2 = vrot.slane %v423_v56, 4  ;;  %v524_v8 = vunpack.c.l.b16 %v499_v55  ;;  %v859_v34 = vor.u32 %v858_v19, %v855_v18  ;;  %v3808_v55 = vld [vmem:[%s4887_s1 + $0x80] sm:$0xff]  ;;  %v3804_v58 = vld [vmem:[%s4008_s10 + $0xc] sm:$0xf0] }
  0x2a   : > { %v443_v23 = vsel %vm4034_vm2, %v438_v14, %v442_v4  ;;  %v3816_v56 = vld [vmem:[%s4887_s1 + $0xc0] sm:$0xff]  ;;  %v883_v61 = vrot.slane %v881_v50, 4  ;;  %v886_v62 = vrot.slane %v884_v51, 5  ;;  %v3229_v14 = vld [vmem:[%s4008_s10 + $0x28] sm:$0xf] }
  0x2b   : > { %358 = vmatmul.bf16.vlgmr.msra.gmra.mxu2 %v4065_v11  ;;  %348 = vmatmul.bf16.vlgmr.msra.gmra.mxu0 %v4082_v25  ;;  %v429_v13 = vsel %vm4034_vm2, %v424_v2, %v428_v57  ;;  %v528_v26 = vpack.c.b16 %v524_v8, %v523_v7  ;;  %v860_v44 = vrot.slane %v859_v34, 4  ;;  %v3175_v57 = vld [vmem:[%s4008_s10 + $0x8] sm:$0xf]  ;;  %v3228_v2 = vld [vmem:[%s4008_s10 + $0x24] sm:$0x1]  ;;  %v895_v18 = vshrl.u32 %v3229_v14, 16 }
  0x2c   : > { %658 = vmatpush.bf16.msrb.mxu2 %v3787_v12  ;;  %1031 = vmatpush.bf16.msrb.mxu0 %v3823_v16  ;;  %v3027_v12 = vld [vmem:[%s4008_s10 + $0x10] sm:$0xf]  ;;  %v841_v16 = vrot.slane %v839_v60, 4  ;;  %v872_v60 = vrot.slane %v870_v49, 5  ;;  %v3176_v3 = vor.u32 %v3804_v58, %v3175_v57  ;;  %v887_v6 = vor.u32 %v886_v62, %v883_v61  ;;  %v3232_v34 = vld [vmem:[%s4008_s10 + $0x34] sm:$0x1] }
  0x2d   : > { %785 = vmatpush.bf16.msrb.mxu3 %v3815_v15  ;;  %589 = vmatmul.bf16.vlgmr.msra.gmra.mxu1 %v525_v35  ;;  %v3777_v15 = vld [vmem:[%s4008_s10 + $0x14] sm:$0xf0]  ;;  %v862_v35 = vshll.u32 %v3224_v22, 16  ;;  %v890_v7 = vshll.u32 %v3228_v2, 16  ;;  %v898_v19 = vshll.u32 %v3229_v14, 16  ;;  %v918_v40 = vshll.u32 %v3232_v34, 16 }
  0x2e   : > { %599 = vmatmul.bf16.vlgmr.msra.gmra.mxu3 %v527_v21  ;;  %v3222_v21 = vld [vmem:[%s4008_s10 + $0xc] sm:$0x1]  ;;  %v845_v31 = vor.u32 %v844_v17, %v841_v16  ;;  %v3236_v61 = vld [vmem:[%s4008_s10 + $0x44] sm:$0x1]  ;;  %v3891_v34 = vld [vmem:[%s4888_s2 + $0x1b8] sm:$0xff] }
  0x2f   : > { %v848_v32 = vshll.u32 %v3222_v21, 16  ;;  %v864_v45 = vrot.slane %v862_v35, 5  ;;  %v3179_v21 = vld [vmem:[%s4008_s10 + $0x18] sm:$0xf] }
  0x30   : > { %659 = vmatpush.bf16.msrb.mxu2 %v3786_v27  ;;  %1032 = vmatpush.bf16.msrb.mxu0 %v3822_v29  ;;  %v519_v27 = vunpack.c.l.b16 %v429_v13  ;;  %v4144_v29 = vor.u32 %v3777_v15, %v3027_v12  ;;  %v888_v12 = vrot.slane %v887_v6, 4  ;;  %v892_v13 = vrot.slane %v890_v7, 5  ;;  %v3231_v15 = vld [vmem:[%s4008_s10 + $0x30] sm:$0xf] }
  0x31   : > { %786 = vmatpush.bf16.msrb.mxu3 %v3814_v28  ;;  %v520_v28 = vunpack.c.l.b16 %v443_v23  ;;  %v865_v54 = vsel %vm4034_vm2, %v860_v44, %v864_v45  ;;  %v920_v44 = vrot.slane %v918_v40, 5  ;;  %v3233_v45 = vld [vmem:[%s4008_s10 + $0x38] sm:$0xf]  ;;  %v3849_v40 = vld [vmem:[%s4888_s2 + $0xa8] sm:$0xff] }
  0x32   : > { %v893_v17 = vsel %vm4034_vm2, %v888_v12, %v892_v13  ;;  %v923_v49 = vshrl.u32 %v3233_v45, 16  ;;  %v926_v50 = vshll.u32 %v3233_v45, 16  ;;  %v3807_v12 = vld [vmem:[%s4008_s10 + $0x3c] sm:$0xf0] }
  0x33   : > { %v526_v38 = vpack.c.b16 %v520_v28, %v519_v27  ;;  %v970_v23 = vunpack.c.l.b16 %v893_v17  ;;  %v897_v27 = vrot.slane %v895_v18, 4  ;;  %v900_v28 = vrot.slane %v898_v19, 5  ;;  %v3835_v17 = vld [vmem:[%s4888_s2 + $0x38] sm:$0xff] }
  0x34   : > { %660 = vmatpush.bf16.msrb.mxu2 %v3785_v42  ;;  %1033 = vmatpush.bf16.msrb.mxu0 %v3821_v47  ;;  %v846_v42 = vrot.slane %v845_v31, 4  ;;  %v3817_v47 = vld [vmem:[%s4887_s1 + $0xc8] sm:$0xff]  ;;  %v928_v57 = vrot.slane %v926_v50, 5 }
  0x35   : > { %787 = vmatpush.bf16.msrb.mxu3 %v3813_v43  ;;  %v850_v43 = vrot.slane %v848_v32, 5  ;;  %v3230_v32 = vld [vmem:[%s4008_s10 + $0x2c] sm:$0x1] }
  0x37   : > { %v851_v53 = vsel %vm4034_vm2, %v846_v42, %v850_v43 }
  0x38   : > { %661 = vmatpush.bf16.msrb.mxu2 %v3784_v59  ;;  %1034 = vmatpush.bf16.msrb.mxu0 %v3820_v1  ;;  %v869_v59 = vrot.slane %v867_v48, 4  ;;  %v967_v63 = vunpack.c.l.b16 %v851_v53  ;;  %v3226_v1 = vld [vmem:[%s4008_s10 + $0x1c] sm:$0x1]  ;;  %v3806_v53 = vld [vmem:[%s4008_s10 + $0x2c] sm:$0xf0] }
  0x39   : > { %788 = vmatpush.bf16.msrb.mxu3 %v3812_v0  ;;  %v968_v0 = vunpack.c.l.b16 %v865_v54  ;;  %v876_v5 = vshll.u32 %v3226_v1, 16 }
  0x3a   : > { %v873_v4 = vor.u32 %v872_v60, %v869_v59  ;;  %v3234_v60 = vld [vmem:[%s4008_s10 + $0x3c] sm:$0x1] }
  0x3b   : > { %363 = vmatmul.bf16.gmra.mxu2 %v4142_v24  ;;  %353 = vmatmul.bf16.gmra.mxu0 %v4144_v29  ;;  %v975_v8 = vpack.c.b16 %v968_v0, %v967_v63  ;;  %v932_v1 = vshll.u32 %v3234_v60, 16 }
  0x3c   : > { %662 = vmatpush.bf16.msrb.mxu2 %v3783_v9  ;;  %1035 = vmatpush.bf16.msrb.mxu0 %v3819_v20  ;;  %v874_v9 = vrot.slane %v873_v4, 4  ;;  %v912_v20 = vshll.u32 %v3231_v15, 16 }
  0x3d   : > { %789 = vmatpush.bf16.msrb.mxu3 %v3811_v10  ;;  %594 = vmatmul.bf16.gmra.mxu1 %v526_v38  ;;  %v878_v10 = vrot.slane %v876_v5, 5  ;;  %v904_v38 = vshll.u32 %v3230_v32, 16  ;;  %v934_v5 = vrot.slane %v932_v1, 5  ;;  %v1135_v1 = vld [vmem:[#allocation2 + $0x1c] sm:$0x1] }
  0x3e   : > { %604 = vmatmul.bf16.gmra.mxu3 %v528_v26  ;;  %v3805_v26 = vld [vmem:[%s4008_s10 + $0x1c] sm:$0xf0]  ;;  %v914_v31 = vrot.slane %v912_v20, 5 }
  0x3f   : > { %v879_v16 = vsel %vm4034_vm2, %v874_v9, %v878_v10  ;;  %v3180_v35 = vor.u32 %v3805_v26, %v3179_v21  ;;  %v906_v42 = vrot.slane %v904_v38, 5  ;;  %v3187_v10 = vld [vmem:[%s4008_s10 + $0x38] sm:$0xf]  ;;  %v3833_v21 = vld [vmem:[%s4888_s2 + $0x28] sm:$0xff] }
  0x40   : > { %663 = vmatpush.bf16.msrb.mxu2 %v3782_v30  ;;  %1036 = vmatpush.bf16.msrb.mxu0 %v3818_v37  ;;  %v969_v22 = vunpack.c.l.b16 %v879_v16  ;;  %v901_v37 = vor.u32 %v900_v28, %v897_v27 }
  0x41   : > { %790 = vmatpush.bf16.msrb.mxu3 %v3810_v36 }
  0x42   : > { %v976_v36 = vpack.c.b16 %v970_v23, %v969_v22  ;;  %v3863_v22 = vld [vmem:[%s4888_s2 + $0xf8] sm:$0xff]  ;;  %v3850_v23 = vld [vmem:[%s4888_s2 + $0xb0] sm:$0xff] }
  0x44   : > { %664 = vmatpush.bf16.msrb.mxu2 %v3781_v41  ;;  %1037 = vmatpush.bf16.msrb.mxu0 %v3817_v47  ;;  %v902_v41 = vrot.slane %v901_v37, 4 }
  0x45   : > { %791 = vmatpush.bf16.msrb.mxu3 %v3809_v46  ;;  %v3235_v46 = vld [vmem:[%s4008_s10 + $0x40] sm:$0xf] }
  0x46   : > { %v907_v47 = vsel %vm4034_vm2, %v902_v41, %v906_v42  ;;  %v940_v51 = vshll.u32 %v3235_v46, 16  ;;  %v3842_v41 = vld [vmem:[%s4888_s2 + $0x70] sm:$0xff]  ;;  %v3831_v42 = vld [vmem:[%s4888_s2 + $0x18] sm:$0xff] }
  0x47   : > { %v971_v54 = vunpack.c.l.b16 %v907_v47  ;;  %v3841_v47 = vld [vmem:[%s4888_s2 + $0x68] sm:$0xff] }
  0x48   : > { %665 = vmatpush.bf16.msrb.mxu2 %v3780_v52  ;;  %1038 = vmatpush.bf16.msrb.mxu0 %v3816_v56  ;;  %v3183_v52 = vld [vmem:[%s4008_s10 + $0x28] sm:$0xf]  ;;  %v925_v56 = vrot.slane %v923_v49, 4  ;;  %v942_v59 = vrot.slane %v940_v51, 5  ;;  %v3830_v51 = vld [vmem:[%s4888_s2 + $0x10] sm:$0xff] }
  0x49   : > { %792 = vmatpush.bf16.msrb.mxu3 %v3808_v55  ;;  %v3184_v62 = vor.u32 %v3806_v53, %v3183_v52  ;;  %v3860_v53 = vld [vmem:[%s4888_s2 + $0xe0] sm:$0xff] }
  0x4a   : > { %v929_v0 = vor.u32 %v928_v57, %v925_v56  ;;  %v3829_v56 = vld [vmem:[%s4888_s2 + $0x8] sm:$0xff]  ;;  %v3859_v57 = vld [vmem:[%s4888_s2 + $0xd8] sm:$0xff] }
  0x4b   : > { %666 = vmatmul.bf16.vlgmr.msrb.gmra.mxu2 %v4082_v25  ;;  %1039 = vmatmul.bf16.vlgmr.msrb.gmra.mxu0 %v975_v8  ;;  %v909_v25 = vshrl.u32 %v3231_v15, 16  ;;  %v3188_v15 = vor.u32 %v3807_v12, %v3187_v10  ;;  %v3844_v10 = vld [vmem:[%s4888_s2 + $0x80] sm:$0xff] }
  0x4c   : > { %v930_v4 = vrot.slane %v929_v0, 4  ;;  %1609 = vmatpush.bf16.msra.mxu2 %v3835_v17  ;;  %1912 = vmatpush.bf16.msra.mxu0 %v3863_v22  ;;  %v1109_v0 = vld [vmem:[#allocation2 + $0x18] sm:$0x1]  ;;  %v1138_v17 = vld [vmem:[#allocation2 + $0x24] sm:$0x1] }
  0x4d   : > { %v911_v30 = vrot.slane %v909_v25, 4  ;;  %v3834_v25 = vld [vmem:[%s4888_s2 + $0x30] sm:$0xff]  ;;  %v4356_v22 = vld [vmem:[%s4890_s4] ss:$0 sm:$0xff] }
  0x4e   : > { %793 = vmatmul.bf16.vlgmr.msrb.gmra.mxu3 %v3176_v3  ;;  %v946_v3 = vshll.u32 %v3236_v61, 16  ;;  %v935_v8 = vsel %vm4034_vm2, %v930_v4, %v934_v5  ;;  %v1110_v4 = vsel %vm4245_vm6, 0, %v1109_v0  ;;  %v1136_v5 = vsel %vm4252_vm7, 0, %v1135_v1 }
  0x4f   : > { %v915_v39 = vor.u32 %v914_v31, %v911_v30  ;;  %v973_v13 = vunpack.c.l.b16 %v935_v8  ;;  %v1103_v30 = vld [vmem:[#allocation2 + $0x8] sm:$0x1]  ;;  %v1129_v31 = vld [vmem:[#allocation2 + $0xc] sm:$0x1]  ;;  %1111 = vst [vmem:[#allocation2 + $0x18] sm:$0x1] %v1110_v4 }
  0x50   : > { %v948_v7 = vrot.slane %v946_v3, 5  ;;  %1610 = vmatpush.bf16.msra.mxu2 %v3834_v25  ;;  %v1104_v32 = vsel %vm4245_vm6, 0, %v1103_v30  ;;  %v1130_v38 = vsel %vm4252_vm7, 0, %v1129_v31  ;;  %1137 = vst [vmem:[#allocation2 + $0x1c] sm:$0x1] %v1136_v5  ;;  %v3838_v8 = vld [vmem:[%s4888_s2 + $0x50] sm:$0xff] }
  0x51   : > { %v916_v43 = vrot.slane %v915_v39, 4  ;;  %1105 = vst [vmem:[#allocation2 + $0x8] sm:$0x1] %v1104_v32  ;;  %v3862_v39 = vld [vmem:[%s4888_s2 + $0xf0] sm:$0xff]  ;;  %v3856_v25 = vld [vmem:[%s4888_s2 + $0xc0] sm:$0xff]  ;;  %v1139_v31 = vsel %vm4252_vm7, 0, %v1138_v17 }
  0x52   : > { %1131 = vst [vmem:[#allocation2 + $0xc] sm:$0x1] %v1130_v38  ;;  %1913 = vmatpush.bf16.msra.mxu0 %v3862_v39  ;;  %v1118_v5 = vld [vmem:[#allocation2 + $0x30] sm:$0x1] }
  0x53   : > { %v921_v48 = vsel %vm4034_vm2, %v916_v43, %v920_v44  ;;  %v3861_v43 = vld [vmem:[%s4888_s2 + $0xe8] sm:$0xff]  ;;  %v3848_v44 = vld [vmem:[%s4888_s2 + $0xa0] sm:$0xff]  ;;  %1140 = vst [vmem:[#allocation2 + $0x24] sm:$0x1] %v1139_v31  ;;  %v1119_v17 = vsel %vm4245_vm6, 0, %v1118_v5 }
  0x54   : > { %v972_v55 = vunpack.c.l.b16 %v921_v48  ;;  %1611 = vmatpush.bf16.msra.mxu2 %v3833_v21  ;;  %v1106_v48 = vld [vmem:[#allocation2 + $0x10] sm:$0x1]  ;;  %1120 = vst [vmem:[#allocation2 + $0x30] sm:$0x1] %v1119_v17 }
  0x55   : > { %v1107_v50 = vsel %vm4245_vm6, 0, %v1106_v48 }
  0x56   : > { %v977_v63 = vpack.c.b16 %v972_v55, %v971_v54  ;;  %1914 = vmatpush.bf16.msra.mxu0 %v3861_v43  ;;  %1108 = vst [vmem:[#allocation2 + $0x10] sm:$0x1] %v1107_v50  ;;  %v3847_v54 = vld [vmem:[%s4888_s2 + $0x98] sm:$0xff]  ;;  %v3840_v55 = vld [vmem:[%s4888_s2 + $0x60] sm:$0xff]  ;;  %v1141_v43 = vld [vmem:[#allocation2 + $0x2c] sm:$0x1] }
  0x5a   : > { %1915 = vmatpush.bf16.msra.mxu0 %v3860_v53 }
  0x5b   : > { %671 = vmatmul.bf16.gmra.mxu2 %v4144_v29  ;;  %1044 = vmatmul.bf16.gmra.mxu0 %v976_v36  ;;  %v937_v29 = vshrl.u32 %v3235_v46, 16  ;;  %v3832_v36 = vld [vmem:[%s4888_s2 + $0x20] sm:$0xff] }
  0x5c   : > { %1612 = vmatpush.bf16.msra.mxu2 %v3832_v36 }
  0x5d   : > { %v939_v58 = vrot.slane %v937_v29, 4  ;;  %v1132_v29 = vld [vmem:[#allocation2 + $0x14] sm:$0x1] }
  0x5e   : > { %798 = vmatmul.bf16.gmra.mxu3 %v3180_v35  ;;  %v3843_v35 = vld [vmem:[%s4888_s2 + $0x78] sm:$0xff]  ;;  %v1133_v52 = vsel %vm4252_vm7, 0, %v1132_v29  ;;  %1916 = vmatpush.bf16.msra.mxu0 %v3859_v57  ;;  %v1142_v29 = vsel %vm4252_vm7, 0, %v1141_v43 }
  0x5f   : > { %v943_v2 = vor.u32 %v942_v59, %v939_v58  ;;  %1508 = vmatpush.bf16.msrb.mxu1 %v3843_v35  ;;  %1134 = vst [vmem:[#allocation2 + $0x14] sm:$0x1] %v1133_v52  ;;  %v3945_v58 = vmov 0   ;;  %v3846_v59 = vld [vmem:[%s4888_s2 + $0x90] sm:$0xff]  ;;  %v3836_v35 = vld [vmem:[%s4888_s2 + $0x40] sm:$0xff] }
  0x60   : > { %1613 = vmatpush.bf16.msra.mxu2 %v3831_v42  ;;  %1094 = vst [vmem:[#allocation2] sm:$0xf] %v3945_v58  ;;  %v1115_v42 = vld [vmem:[#allocation2 + $0x28] sm:$0x1] }
  0x61   : > { %v944_v6 = vrot.slane %v943_v2, 4  ;;  %1095 = vst [vmem:[#allocation2 + $0x4] sm:$0x1] %v3945_v58  ;;  %v3828_v2 = vld [vmem:[%s4888_s2] sm:$0xff]  ;;  %v1116_v50 = vsel %vm4245_vm6, 0, %v1115_v42 }
  0x62   : > { %1097 = vst [vmem:[#allocation2 + $0x48] sm:$0xf] %v3945_v58 }
  0x63   : > { %v949_v9 = vsel %vm4034_vm2, %v944_v6, %v948_v7  ;;  %1509 = vmatpush.bf16.msrb.mxu1 %v3842_v41  ;;  %1098 = vst [vmem:[#allocation2 + $0x4c] sm:$0x1] %v3945_v58  ;;  %v3858_v6 = vld [vmem:[%s4888_s2 + $0xd0] sm:$0xff]  ;;  %v3845_v7 = vld [vmem:[%s4888_s2 + $0x88] sm:$0xff]  ;;  %v3892_v58 = vld [vmem:[%s4888_s2 + $0x1c0] sm:$0xff] }
  0x64   : > { %v974_v14 = vunpack.c.l.b16 %v949_v9  ;;  %1614 = vmatpush.bf16.msra.mxu2 %v3830_v51  ;;  %1917 = vmatpush.bf16.msra.mxu0 %v3858_v6  ;;  %v3857_v9 = vld [vmem:[%s4888_s2 + $0xc8] sm:$0xff]  ;;  %1117 = vst [vmem:[#allocation2 + $0x28] sm:$0x1] %v1116_v50  ;;  %v1144_v6 = vld [vmem:[#allocation2 + $0x34] sm:$0x1] }
  0x65   : > { %1143 = vst [vmem:[#allocation2 + $0x2c] sm:$0x1] %v1142_v29 }
  0x66   : > { %v978_v16 = vpack.c.b16 %v974_v14, %v973_v13  ;;  %v1244_v42 = vld [vmem:[#allocation2 + $0x14] sm:$0x1] }
  0x67   : > { %1510 = vmatpush.bf16.msrb.mxu1 %v3841_v47  ;;  %v1283_v57 = vld [vmem:[#allocation2] sm:$0xf] }
  0x68   : > { %1615 = vmatpush.bf16.msra.mxu2 %v3829_v56  ;;  %1918 = vmatpush.bf16.msra.mxu0 %v3857_v9 }
  0x6b   : > { %676 = vmatmul.bf16.gmra.mxu2 %v4065_v11  ;;  %1049 = vmatmul.bf16.gmra.mxu0 %v977_v63  ;;  %v3839_v63 = vld [vmem:[%s4888_s2 + $0x58] sm:$0xff] }
  0x6c   : > { %1511 = vmatpush.bf16.msrb.mxu1 %v3840_v55  ;;  %1616 = vmatpush.bf16.msra.mxu2 %v3828_v2 }
  0x6d   : > { %1919 = vmatpush.bf16.msra.mxu0 %v3856_v25  ;;  %v1145_v25 = vsel %vm4252_vm7, 0, %v1144_v6 }
  0x6e   : > { %803 = vmatmul.bf16.gmra.mxu3 %v3184_v62  ;;  %1146 = vst [vmem:[#allocation2 + $0x34] sm:$0x1] %v1145_v25 }
  0x70   : > { %1512 = vmatpush.bf16.msrb.mxu1 %v3839_v63 }
  0x74   : > { %1513 = vmatpush.bf16.msrb.mxu1 %v3838_v8  ;;  %v1319_v8 = vshll.u32 %v1283_v57, 16 }
  0x7b   : > { %681 = vmatmul.bf16.gmra.mxu2 %v4142_v24  ;;  %1054 = vmatmul.bf16.gmra.mxu0 %v978_v16  ;;  %v3851_v24 = vld [vmem:[%s4888_s2 + $0xb8] sm:$0xff]  ;;  %v1112_v16 = vld [vmem:[#allocation2 + $0x20] sm:$0x1] }
  0x7c   : > { %1778 = vmatpush.bf16.msra.mxu3 %v3851_v24  ;;  %v1113_v30 = vsel %vm4245_vm6, 0, %v1112_v16  ;;  %v1638_v16 = vld [vmem:[#allocation2] sm:$0xe] }
  0x7d   : > { %1114 = vst [vmem:[#allocation2 + $0x20] sm:$0x1] %v1113_v30 }
  0x7e   : > { %808 = vmatmul.bf16.gmra.mxu3 %v3188_v15  ;;  %v3837_v15 = vld [vmem:[%s4888_s2 + $0x48] sm:$0xff] }
  0x7f   : > { %1514 = vmatpush.bf16.msrb.mxu1 %v3837_v15  ;;  %v1307_v15 = vld [vmem:[#allocation2 + $0x4] sm:$0x1] }
  0x80   : > { %1779 = vmatpush.bf16.msra.mxu3 %v3850_v23  ;;  %v1667_v30 = vrot.slane %v1307_v15, 5 }
  0x83   : > { %1515 = vmatpush.bf16.msrb.mxu1 %v3836_v35 }
  0x84   : > { %1780 = vmatpush.bf16.msra.mxu3 %v3849_v40 }
  0x88   : > { %1781 = vmatpush.bf16.msra.mxu3 %v3848_v44 }
  0x8c   : > { %1782 = vmatpush.bf16.msra.mxu3 %v3847_v54 }
  0x90   : > { %1783 = vmatpush.bf16.msra.mxu3 %v3846_v59  ;;  %v1235_v59 = vld [vmem:[#allocation2 + $0x8] sm:$0xf] }
  0x94   : > { %1784 = vmatpush.bf16.msra.mxu3 %v3845_v7  ;;  %v1316_v7 = vshrl.u32 %v1283_v57, 16 }
  0x96   : > { %v1318_v31 = vrot.slane %v1316_v7, 4  ;;  %v3871_v7 = vld [vmem:[%s4888_s2 + $0x138] sm:$0xff] }
  0x97   : > { %2158 = vmatpush.bf16.msra.mxu1 %v3871_v7  ;;  %v1256_v7 = vld [vmem:[#allocation2 + $0x24] sm:$0x1] }
  0x98   : > { %1785 = vmatpush.bf16.msra.mxu3 %v3844_v10 }
  0x9c   : > { %2467 = vmatpush.bf16.msrb.mxu3 %v3891_v34 }
  0xa8   : > { %v4215_v11 = vpop.f32.mrf.mxu0 }
  0xaa   : > { %v590_v62 = vpop.f32.mrf.mxu1 }
  0xae   : > { %v4220_v18 = vpop.f32.mrf.mxu2 }
  0xb0   : > { %v4227_v20 = vpop.f32.mrf.mxu0 }
  0xb1   : > { %v4222_v19 = vpop.f32.mrf.mxu3 }
  0xb2   : > { %v592_v24 = vpop.f32.mrf.mxu1 }
  0xb6   : > { %v4241_v26 = vpop.f32.mrf.mxu2 }
  0xb8   : > { %v4262_v37 = vpop.f32.mrf.mxu0 }
  0xb9   : > { %v4243_v27 = vpop.f32.mrf.mxu3 }
  0xba   : > { %v595_v52 = vpop.f32.mrf.mxu1 }
  0xbe   : > { %v4284_v45 = vpop.f32.mrf.mxu2 }
  0xc0   : > { %v4291_v49 = vpop.f32.mrf.mxu0 }
  0xc1   : > { %v4286_v46 = vpop.f32.mrf.mxu3 }
  0xc6   : > { %v4318_v60 = vpop.f32.mrf.mxu2 }
  0xc7   : > { %4898 = vst [vmem:[#allocation3_spill] sm:$0xff] %v4318_v60 }
  0xc8   : > { %v1040_v3 = vpop.f32.mrf.mxu0 }
  0xc9   : > { %v4320_v61 = vpop.f32.mrf.mxu3 }
  0xce   : > { %v667_v12 = vpop.f32.mrf.mxu2 }
  0xcf   : > { %v668_v14 = vadd.f32 %v667_v12, %v590_v62  ;;  %v1238_v62 = vld [vmem:[#allocation2 + $0xc] sm:$0x1] }
  0xd0   : > { %v1042_v23 = vpop.f32.mrf.mxu0 }
  0xd1   : > { %v794_v13 = vpop.f32.mrf.mxu3 }
  0xd2   : > { %v814_v21 = vadd.f32 %v794_v13, %v668_v14 }
  0xd4   : > { %v1060_v32 = vadd.f32 %v1040_v3, %v814_v21 }
  0xd6   : > { %v1070_v36 = vadd.f32 %v4356_v22, %v1060_v32  ;;  %v669_v38 = vpop.f32.mrf.mxu2  ;;  %v1321_v32 = vrot.slane %v1319_v8, 5 }
  0xd7   : > { %v670_v41 = vadd.f32 %v669_v38, %v592_v24  ;;  %v597_v38 = vpop.f32.mrf.mxu1 }
  0xd8   : > { %v1078_v40 = vmax.f32 %v1070_v36, 0.0  ;;  %v1045_v48 = vpop.f32.mrf.mxu0 }
  0xd9   : > { %v796_v39 = vpop.f32.mrf.mxu3 }
  0xda   : > { %v1086_v44 = vpack.c.bf16 %v1078_v40, %v1078_v40  ;;  %v815_v47 = vadd.f32 %v796_v39, %v670_v41  ;;  %v1241_v41 = vld [vmem:[#allocation2 + $0x10] sm:$0xf] }
  0xdc   : > { %v1154_v51 = vshrl.u32 %v1086_v44, 16  ;;  %v1061_v53 = vadd.f32 %v1042_v23, %v815_v47  ;;  %v1157_v55 = vshll.u32 %v1086_v44, 16  ;;  %v3381_v23 = vrot.slane %v1638_v16, 9  ;;  %v1247_v16 = vld [vmem:[#allocation2 + $0x18] sm:$0xf] }
  0xde   : > { %v1156_v54 = vrot.slane %v1154_v51, 7  ;;  %v1071_v56 = vadd.f32 %v4356_v22, %v1061_v53  ;;  %v672_v63 = vpop.f32.mrf.mxu2  ;;  %v3335_v51 = vld [vmem:[#allocation2] sm:$0xf]  ;;  %v1322_v53 = vor.u32 %v1321_v32, %v1318_v31 }
  0xdf   : > { %v673_v4 = vadd.f32 %v672_v63, %v595_v52  ;;  %v1668_v52 = vsel %vm4387_vm12, %v3381_v23, %v1667_v30 }
  0xe0   : > { %v1159_v1 = vor.u32 %v1157_v55, %v1156_v54  ;;  %v1160_v2 = vrot.slane %v1156_v54, 4  ;;  %v1079_v3 = vmax.f32 %v1071_v56, 0.0  ;;  %v1047_v14 = vpop.f32.mrf.mxu0  ;;  %v1325_v54 = vshll.u32 %v1307_v15, 16 }
  0xe1   : > { %v799_v0 = vpop.f32.mrf.mxu3 }
  0xe2   : > { %v1236_v9 = vsel %vm4372_vm9, %v1159_v1, %v1235_v59  ;;  %v1239_v10 = vsel %vm4245_vm6, %v1160_v2, %v1238_v62  ;;  %v1087_v12 = vpack.c.bf16 %v1079_v3, %v1079_v3  ;;  %v816_v13 = vadd.f32 %v799_v0, %v673_v4 }
  0xe3   : > { %1237 = vst [vmem:[#allocation2 + $0x8] sm:$0xf] %v1236_v9  ;;  %v1714_v9 = vunpack.c.l.b16 %v1668_v52 }
  0xe4   : > { %1240 = vst [vmem:[#allocation2 + $0xc] sm:$0x1] %v1239_v10  ;;  %v1162_v24 = vshrl.u32 %v1087_v12, 16  ;;  %v1062_v21 = vadd.f32 %v1045_v48, %v816_v13  ;;  %v1165_v36 = vshll.u32 %v1087_v12, 16  ;;  %v1323_v12 = vrot.slane %v1322_v53, 4 }
  0xe5   : > { %v1327_v13 = vrot.slane %v1325_v54, 5 }
  0xe6   : > { %v1164_v35 = vrot.slane %v1162_v24, 7  ;;  %v1072_v39 = vadd.f32 %v4356_v22, %v1062_v21  ;;  %v674_v43 = vpop.f32.mrf.mxu2  ;;  %v1121_v24 = vld [vmem:[#allocation2 + $0x38] sm:$0x1]  ;;  %v1250_v21 = vld [vmem:[#allocation2 + $0x1c] sm:$0x1] }
  0xe7   : > { %v675_v29 = vadd.f32 %v674_v43, %v597_v38  ;;  %v1147_v43 = vld [vmem:[#allocation2 + $0x3c] sm:$0x1] }
  0xe8   : > { %v1167_v47 = vor.u32 %v1165_v36, %v1164_v35  ;;  %v1168_v48 = vrot.slane %v1164_v35, 4  ;;  %v1080_v50 = vmax.f32 %v1072_v39, 0.0  ;;  %v1050_v5 = vpop.f32.mrf.mxu0  ;;  %v1122_v36 = vsel %vm4245_vm6, 0, %v1121_v24 }
  0xe9   : > { %v801_v44 = vpop.f32.mrf.mxu3  ;;  %1123 = vst [vmem:[#allocation2 + $0x38] sm:$0x1] %v1122_v36 }
  0xea   : > { %v1242_v55 = vsel %vm4372_vm9, %v1167_v47, %v1241_v41  ;;  %v1245_v56 = vsel %vm4245_vm6, %v1168_v48, %v1244_v42  ;;  %v1088_v57 = vpack.c.bf16 %v1080_v50, %v1080_v50  ;;  %v817_v59 = vadd.f32 %v801_v44, %v675_v29  ;;  %v3824_v62 = vld [vmem:[#allocation2 + $0x4] sm:$0xf0] }
  0xeb   : > { %v1639_v63 = vld [vmem:[#allocation2 + $0x8] sm:$0xe]  ;;  %1243 = vst [vmem:[#allocation2 + $0x10] sm:$0xf] %v1242_v55  ;;  %v3336_v0 = vor.u32 %v3824_v62, %v3335_v51  ;;  %v1308_v1 = vld [vmem:[#allocation2 + $0xc] sm:$0x1] }
  0xec   : > { %v3382_v2 = vrot.slane %v1639_v63, 9  ;;  %1246 = vst [vmem:[#allocation2 + $0x14] sm:$0x1] %v1245_v56  ;;  %v1170_v3 = vshrl.u32 %v1088_v57, 16  ;;  %v1063_v4 = vadd.f32 %v1047_v14, %v817_v59  ;;  %v1671_v6 = vrot.slane %v1308_v1, 5 }
  0xed   : > { %v1173_v8 = vshll.u32 %v1088_v57, 16  ;;  %1617 = vmatmul.bf16.vlgmr.msra.gmra.mxu2 %v3336_v0  ;;  %v1284_v10 = vld [vmem:[#allocation2 + $0x8] sm:$0xf]  ;;  %v1339_v35 = vshll.u32 %v1308_v1, 16  ;;  %v1328_v56 = vsel %vm4034_vm2, %v1323_v12, %v1327_v13  ;;  %v1148_v59 = vsel %vm4252_vm7, 0, %v1147_v43 }
  0xee   : > { %v1172_v15 = vrot.slane %v1170_v3, 7  ;;  %v1073_v17 = vadd.f32 %v4356_v22, %v1063_v4  ;;  %v1672_v25 = vsel %vm4387_vm12, %v3382_v2, %v1671_v6  ;;  %v1330_v14 = vshrl.u32 %v1284_v10, 16  ;;  %v677_v23 = vpop.f32.mrf.mxu2  ;;  %v3455_v53 = vld [vmem:[#allocation2 + $0x8] sm:$0xf]  ;;  %v3870_v2 = vld [vmem:[%s4888_s2 + $0x130] sm:$0xff] }
  0xef   : > { %v1715_v31 = vunpack.c.l.b16 %v1672_v25  ;;  %v1333_v32 = vshll.u32 %v1284_v10, 16  ;;  %v678_v42 = vadd.f32 %v677_v23, %v4222_v19  ;;  %v1341_v1 = vrot.slane %v1339_v35, 5  ;;  %v1253_v6 = vld [vmem:[#allocation2 + $0x20] sm:$0xf]  ;;  %1149 = vst [vmem:[#allocation2 + $0x3c] sm:$0x1] %v1148_v59  ;;  %2159 = vmatpush.bf16.msra.mxu1 %v3870_v2 }
  0xf0   : > { %v1175_v38 = vor.u32 %v1173_v8, %v1172_v15  ;;  %v1176_v39 = vrot.slane %v1172_v15, 4  ;;  %v1081_v41 = vmax.f32 %v1073_v17, 0.0  ;;  %v1332_v47 = vrot.slane %v1330_v14, 4  ;;  %v1052_v13 = vpop.f32.mrf.mxu0 }
  0xf1   : > { %v804_v30 = vpop.f32.mrf.mxu3  ;;  %v1722_v44 = vpack.c.b16 %v1715_v31, %v1714_v9  ;;  %v1335_v48 = vrot.slane %v1333_v32, 5  ;;  %v1124_v9 = vld [vmem:[#allocation2 + $0x40] sm:$0x1]  ;;  %v1444_v15 = vunpack.c.l.b16 %v1328_v56 }
  0xf2   : > { %v1248_v50 = vsel %vm4372_vm9, %v1175_v38, %v1247_v16  ;;  %v1251_v29 = vsel %vm4245_vm6, %v1176_v39, %v1250_v21  ;;  %v1089_v51 = vpack.c.bf16 %v1081_v41, %v1081_v41  ;;  %v818_v52 = vadd.f32 %v804_v30, %v678_v42  ;;  %v3852_v54 = vld [vmem:[#allocation2 + $0xc] sm:$0xf0]  ;;  %v1150_v16 = vld [vmem:[#allocation2 + $0x44] sm:$0x1]  ;;  %v3879_v38 = vld [vmem:[%s4888_s2 + $0x178] sm:$0xff] }
  0xf3   : > { %v4410_v55 = vld [vmem:[#allocation2 + $0x10] sm:$0xe]  ;;  %1249 = vst [vmem:[#allocation2 + $0x18] sm:$0xf] %v1248_v50  ;;  %1786 = vmatmul.bf16.vlgmr.msra.gmra.mxu3 %v1722_v44  ;;  %v3456_v19 = vor.u32 %v3852_v54, %v3455_v53  ;;  %v1336_v57 = vor.u32 %v1335_v48, %v1332_v47  ;;  %v4416_v62 = vld [vmem:[#allocation2 + $0x14] sm:$0x1]  ;;  %2332 = vmatpush.bf16.msrb.mxu2 %v3879_v38 }
  0xf4   : > { %1252 = vst [vmem:[#allocation2 + $0x1c] sm:$0x1] %v1251_v29  ;;  %v1178_v63 = vshrl.u32 %v1089_v51, 16  ;;  %v1064_v0 = vadd.f32 %v1050_v5, %v818_v52  ;;  %v3383_v3 = vrot.slane %v4410_v55, 9  ;;  %v1181_v4 = vshll.u32 %v1089_v51, 16  ;;  %v3878_v52 = vld [vmem:[%s4888_s2 + $0x170] sm:$0xff] }
  0xf5   : > { %1920 = vmatmul.bf16.vlgmr.msra.gmra.mxu0 %v3456_v19  ;;  %v1337_v8 = vrot.slane %v1336_v57, 4  ;;  %v1125_v5 = vsel %vm4245_vm6, 0, %v1124_v9  ;;  %v1285_v17 = vld [vmem:[#allocation2 + $0x10] sm:$0xf]  ;;  %v1675_v21 = vrot.slane %v4416_v62, 5  ;;  %v1151_v23 = vsel %vm4252_vm7, 0, %v1150_v16 }
  0xf6   : > { %v1180_v10 = vrot.slane %v1178_v63, 7  ;;  %v1074_v12 = vadd.f32 %v4356_v22, %v1064_v0  ;;  %v679_v25 = vpop.f32.mrf.mxu2  ;;  %1126 = vst [vmem:[#allocation2 + $0x40] sm:$0x1] %v1125_v5  ;;  %v1344_v30 = vshrl.u32 %v1285_v17, 16  ;;  %v3339_v41 = vld [vmem:[#allocation2 + $0x10] sm:$0xf] }
  0xf7   : > { %v1342_v24 = vsel %vm4034_vm2, %v1337_v8, %v1341_v1  ;;  %v680_v36 = vadd.f32 %v679_v25, %v4243_v27  ;;  %1152 = vst [vmem:[#allocation2 + $0x44] sm:$0x1] %v1151_v23  ;;  %v1347_v43 = vshll.u32 %v1285_v17, 16  ;;  %v1353_v44 = vshll.u32 %v4416_v62, 16  ;;  %v1259_v0 = vld [vmem:[#allocation2 + $0x28] sm:$0xf]  ;;  %2333 = vmatpush.bf16.msrb.mxu2 %v3878_v52 }
  0xf8   : > { %v1183_v31 = vor.u32 %v1181_v4, %v1180_v10  ;;  %v1184_v32 = vrot.slane %v1180_v10, 4  ;;  %v1082_v35 = vmax.f32 %v1074_v12, 0.0  ;;  %v1445_v39 = vunpack.c.l.b16 %v1342_v24  ;;  %v1262_v8 = vld [vmem:[#allocation2 + $0x2c] sm:$0x1]  ;;  %v3899_v24 = vld [vmem:[%s4888_s2 + $0x1f8] sm:$0xff] }
  0xf9   : > { %v806_v14 = vpop.f32.mrf.mxu3  ;;  %v1346_v42 = vrot.slane %v1344_v30, 4  ;;  %v1349_v56 = vrot.slane %v1347_v43, 5  ;;  %v1676_v62 = vsel %vm4387_vm12, %v3383_v3, %v1675_v21  ;;  %v3877_v3 = vld [vmem:[%s4888_s2 + $0x168] sm:$0xff]  ;;  %v4459_v17 = vrot.slane %v1353_v44, 5  ;;  %v3890_v21 = vld [vmem:[%s4888_s2 + $0x1b0] sm:$0xff]  ;;  %2713 = vmatpush.bf16.msrb.mxu0 %v3899_v24  ;;  %v3867_v43 = vld [vmem:[%s4888_s2 + $0x118] sm:$0xff] }
  0xfa   : > { %v1254_v47 = vsel %vm4372_vm9, %v1183_v31, %v1253_v6  ;;  %v1257_v27 = vsel %vm4245_vm6, %v1184_v32, %v1256_v7  ;;  %v1090_v48 = vpack.c.bf16 %v1082_v35, %v1082_v35  ;;  %v819_v50 = vadd.f32 %v806_v14, %v680_v36  ;;  %v3825_v29 = vld [vmem:[#allocation2 + $0x14] sm:$0xf0]  ;;  %v3869_v6 = vld [vmem:[%s4888_s2 + $0x128] sm:$0xff]  ;;  %v3868_v14 = vld [vmem:[%s4888_s2 + $0x120] sm:$0xff]  ;;  %v1055_v36 = vpop.f32.mrf.mxu0  ;;  %2468 = vmatpush.bf16.msrb.mxu3 %v3890_v21 }
  0xfb   : > { %v1641_v51 = vld [vmem:[#allocation2 + $0x18] sm:$0xe]  ;;  %1255 = vst [vmem:[#allocation2 + $0x20] sm:$0xf] %v1254_v47  ;;  %v1452_v53 = vpack.c.b16 %v1445_v39, %v1444_v15  ;;  %v3340_v54 = vor.u32 %v3825_v29, %v3339_v41  ;;  %v4445_v55 = vld [vmem:[#allocation2 + $0x1c] sm:$0x1]  ;;  %v1350_v4 = vor.u32 %v1349_v56, %v1346_v42  ;;  %v1716_v16 = vunpack.c.l.b16 %v1676_v62  ;;  %2160 = vmatpush.bf16.msra.mxu1 %v3869_v6 }
  0xfc   : > { %v3384_v19 = vrot.slane %v1641_v51, 9  ;;  %1258 = vst [vmem:[#allocation2 + $0x24] sm:$0x1] %v1257_v27  ;;  %v1186_v57 = vshrl.u32 %v1090_v48, 16  ;;  %v1065_v59 = vadd.f32 %v1052_v13, %v819_v50  ;;  %v1189_v63 = vshll.u32 %v1090_v48, 16  ;;  %v3876_v44 = vld [vmem:[%s4888_s2 + $0x160] sm:$0xff]  ;;  %2334 = vmatpush.bf16.msrb.mxu2 %v3877_v3 }
  0xfd   : > { %1516 = vmatmul.bf16.vlgmr.msrb.gmra.mxu1 %v1452_v53  ;;  %1622 = vmatmul.bf16.gmra.mxu2 %v3340_v54  ;;  %v1679_v1 = vrot.slane %v4445_v55, 5  ;;  %v1286_v2 = vld [vmem:[#allocation2 + $0x18] sm:$0xf]  ;;  %v1367_v25 = vshll.u32 %v4445_v55, 16  ;;  %v1351_v39 = vrot.slane %v1350_v4, 4  ;;  %v3898_v50 = vld [vmem:[%s4888_s2 + $0x1f0] sm:$0xff] }
  0xfe   : > { %v1188_v7 = vrot.slane %v1186_v57, 7  ;;  %v1075_v9 = vadd.f32 %v4356_v22, %v1065_v59  ;;  %v1358_v10 = vshrl.u32 %v1286_v2, 16  ;;  %v1361_v12 = vshll.u32 %v1286_v2, 16  ;;  %v682_v13 = vpop.f32.mrf.mxu2  ;;  %v3459_v35 = vld [vmem:[#allocation2 + $0x18] sm:$0xf]  ;;  %v3889_v29 = vld [vmem:[%s4888_s2 + $0x1a8] sm:$0xff]  ;;  %2714 = vmatpush.bf16.msrb.mxu0 %v3898_v50 }
  0xff   : > { %v1680_v5 = vsel %vm4387_vm12, %v3384_v19, %v1679_v1  ;;  %v683_v32 = vadd.f32 %v682_v13, %v4286_v46  ;;  %2161 = vmatpush.bf16.msra.mxu1 %v3868_v14  ;;  %v1369_v57 = vrot.slane %v1367_v25, 5  ;;  %v1265_v62 = vld [vmem:[#allocation2 + $0x30] sm:$0xf]  ;;  %2469 = vmatpush.bf16.msrb.mxu3 %v3889_v29  ;;  %v3887_v29 = vld [vmem:[%s4888_s2 + $0x198] sm:$0xff] }
 0x100   : > { %v1191_v23 = vor.u32 %v1189_v63, %v1188_v7  ;;  %v1192_v30 = vrot.slane %v1188_v7, 4  ;;  %v1083_v31 = vmax.f32 %v1075_v9, 0.0  ;;  %v1717_v38 = vunpack.c.l.b16 %v1680_v5  ;;  %v1268_v7 = vld [vmem:[#allocation2 + $0x34] sm:$0x1]  ;;  %2335 = vmatpush.bf16.msrb.mxu2 %v3876_v44 }
 0x101   : > { %v809_v15 = vpop.f32.mrf.mxu3  ;;  %v1360_v41 = vrot.slane %v1358_v10, 4  ;;  %v1363_v42 = vrot.slane %v1361_v12, 5  ;;  %v1356_v63 = vsel %vm4034_vm2, %v1351_v39, %v4459_v17  ;;  %v3875_v10 = vld [vmem:[%s4888_s2 + $0x158] sm:$0xff]  ;;  %v3888_v17 = vld [vmem:[%s4888_s2 + $0x1a0] sm:$0xff] }
 0x102   : > { %v1260_v34 = vsel %vm4372_vm9, %v1191_v23, %v1259_v0  ;;  %v1263_v46 = vsel %vm4245_vm6, %v1192_v30, %v1262_v8  ;;  %v1091_v47 = vpack.c.bf16 %v1083_v31, %v1083_v31  ;;  %v820_v27 = vadd.f32 %v809_v15, %v683_v32  ;;  %v3853_v48 = vld [vmem:[#allocation2 + $0x1c] sm:$0xf0]  ;;  %v3866_v23 = vld [vmem:[%s4888_s2 + $0x110] sm:$0xff] }
 0x103   : > { %1261 = vst [vmem:[#allocation2 + $0x28] sm:$0xf] %v1260_v34  ;;  %v1723_v51 = vpack.c.b16 %v1717_v38, %v1716_v16  ;;  %v3460_v52 = vor.u32 %v3853_v48, %v3459_v35  ;;  %v1364_v53 = vor.u32 %v1363_v42, %v1360_v41  ;;  %v4488_v54 = vld [vmem:[#allocation2 + $0x20] sm:$0xe]  ;;  %v4490_v59 = vld [vmem:[#allocation2 + $0x24] sm:$0x1]  ;;  %2162 = vmatpush.bf16.msra.mxu1 %v3867_v43  ;;  %v1446_v31 = vunpack.c.l.b16 %v1356_v63 }
 0x104   : > { %v1287_v55 = vld [vmem:[#allocation2 + $0x20] sm:$0xf]  ;;  %1264 = vst [vmem:[#allocation2 + $0x2c] sm:$0x1] %v1263_v46  ;;  %v1194_v19 = vshrl.u32 %v1091_v47, 16  ;;  %v1066_v56 = vadd.f32 %v1055_v36, %v820_v27  ;;  %v1197_v6 = vshll.u32 %v1091_v47, 16  ;;  %2336 = vmatpush.bf16.msrb.mxu2 %v3875_v10  ;;  %v1057_v46 = vpop.f32.mrf.mxu0  ;;  %2470 = vmatpush.bf16.msrb.mxu3 %v3888_v17 }
 0x105   : > { %1791 = vmatmul.bf16.gmra.mxu3 %v1723_v51  ;;  %1925 = vmatmul.bf16.gmra.mxu0 %v3460_v52  ;;  %v1365_v0 = vrot.slane %v1364_v53, 4  ;;  %v1372_v1 = vshrl.u32 %v1287_v55, 16  ;;  %v1375_v2 = vshll.u32 %v1287_v55, 16  ;;  %v3385_v9 = vrot.slane %v4488_v54, 9  ;;  %v3897_v16 = vld [vmem:[%s4888_s2 + $0x1e8] sm:$0xff]  ;;  %v3874_v38 = vld [vmem:[%s4888_s2 + $0x150] sm:$0xff] }
 0x106   : > { %v1196_v4 = vrot.slane %v1194_v19, 7  ;;  %v1076_v8 = vadd.f32 %v4356_v22, %v1066_v56  ;;  %v684_v12 = vpop.f32.mrf.mxu2  ;;  %v1683_v13 = vrot.slane %v4490_v59, 5  ;;  %v3343_v35 = vld [vmem:[#allocation2 + $0x20] sm:$0xf]  ;;  %2715 = vmatpush.bf16.msrb.mxu0 %v3897_v16  ;;  %v1381_v56 = vshll.u32 %v4490_v59, 16  ;;  %v3886_v10 = vld [vmem:[%s4888_s2 + $0x190] sm:$0xff] }
 0x107   : > { %v1370_v3 = vsel %vm4034_vm2, %v1365_v0, %v1369_v57  ;;  %v1374_v15 = vrot.slane %v1372_v1, 4  ;;  %v1377_v5 = vrot.slane %v1375_v2, 5  ;;  %v685_v21 = vadd.f32 %v684_v12, %v4320_v61  ;;  %v3896_v34 = vld [vmem:[%s4888_s2 + $0x1e0] sm:$0xff]  ;;  %2163 = vmatpush.bf16.msra.mxu1 %v3866_v23  ;;  %v3865_v57 = vld [vmem:[%s4888_s2 + $0x108] sm:$0xff]  ;;  %v1271_v63 = vld [vmem:[#allocation2 + $0x38] sm:$0xf] }
 0x108   : > { %v1199_v25 = vor.u32 %v1197_v6, %v1196_v4  ;;  %v1200_v14 = vrot.slane %v1196_v4, 4  ;;  %v1084_v24 = vmax.f32 %v1076_v8, 0.0  ;;  %v1447_v32 = vunpack.c.l.b16 %v1370_v3  ;;  %2337 = vmatpush.bf16.msrb.mxu2 %v3874_v38  ;;  %v3873_v4 = vld [vmem:[%s4888_s2 + $0x148] sm:$0xff]  ;;  %v1274_v6 = vld [vmem:[#allocation2 + $0x3c] sm:$0x1]  ;;  %2471 = vmatpush.bf16.msrb.mxu3 %v3887_v29 }
 0x109   : > { %v811_v30 = vpop.f32.mrf.mxu3  ;;  %v1378_v36 = vor.u32 %v1377_v5, %v1374_v15  ;;  %v1684_v53 = vsel %vm4387_vm12, %v3385_v9, %v1683_v13  ;;  %v3864_v5 = vld [vmem:[%s4888_s2 + $0x100] sm:$0xff] }
 0x10a   : > { %v1266_v39 = vsel %vm4372_vm9, %v1199_v25, %v1265_v62  ;;  %v1269_v41 = vsel %vm4245_vm6, %v1200_v14, %v1268_v7  ;;  %v1092_v61 = vpack.c.bf16 %v1084_v24, %v1084_v24  ;;  %v821_v42 = vadd.f32 %v811_v30, %v685_v21  ;;  %v3826_v43 = vld [vmem:[#allocation2 + $0x24] sm:$0xf0]  ;;  %2716 = vmatpush.bf16.msrb.mxu0 %v3896_v34 }
 0x10b   : > { %v1643_v44 = vld [vmem:[#allocation2 + $0x28] sm:$0xe]  ;;  %1267 = vst [vmem:[#allocation2 + $0x30] sm:$0xf] %v1266_v39  ;;  %v1453_v47 = vpack.c.b16 %v1447_v32, %v1446_v31  ;;  %v3344_v27 = vor.u32 %v3826_v43, %v3343_v35  ;;  %v4523_v48 = vld [vmem:[#allocation2 + $0x2c] sm:$0x1]  ;;  %v1718_v7 = vunpack.c.l.b16 %v1684_v53  ;;  %2164 = vmatpush.bf16.msra.mxu1 %v3865_v57 }
 0x10c   : > { %v3386_v50 = vrot.slane %v1643_v44, 9  ;;  %1270 = vst [vmem:[#allocation2 + $0x34] sm:$0x1] %v1269_v41  ;;  %v1202_v51 = vshrl.u32 %v1092_v61, 16  ;;  %v1067_v52 = vadd.f32 %v1057_v46, %v821_v42  ;;  %v1687_v54 = vrot.slane %v4523_v48, 5  ;;  %2338 = vmatpush.bf16.msrb.mxu2 %v3873_v4  ;;  %v3872_v35 = vld [vmem:[%s4888_s2 + $0x140] sm:$0xff]  ;;  %2472 = vmatpush.bf16.msrb.mxu3 %v3886_v10 }
 0x10d   : > { %v1205_v55 = vshll.u32 %v1092_v61, 16  ;;  %1521 = vmatmul.bf16.gmra.mxu1 %v1453_v47  ;;  %1627 = vmatmul.bf16.gmra.mxu2 %v3344_v27  ;;  %v1288_v19 = vld [vmem:[#allocation2 + $0x28] sm:$0xf]  ;;  %v1379_v8 = vrot.slane %v1378_v36, 4  ;;  %v1395_v14 = vshll.u32 %v4523_v48, 16  ;;  %v1383_v31 = vrot.slane %v1381_v56, 5 }
 0x10e   : > { %v1204_v62 = vrot.slane %v1202_v51, 7  ;;  %v1077_v0 = vadd.f32 %v4356_v22, %v1067_v52  ;;  %v1688_v1 = vsel %vm4387_vm12, %v3386_v50, %v1687_v54  ;;  %v1386_v2 = vshrl.u32 %v1288_v19, 16  ;;  %v3895_v22 = vld [vmem:[%s4888_s2 + $0x1d8] sm:$0xff]  ;;  %v3463_v17 = vld [vmem:[#allocation2 + $0x28] sm:$0xf]  ;;  %v3894_v41 = vld [vmem:[%s4888_s2 + $0x1d0] sm:$0xff] }
 0x10f   : > { %v1719_v59 = vunpack.c.l.b16 %v1688_v1  ;;  %v1389_v9 = vshll.u32 %v1288_v19, 16  ;;  %2717 = vmatpush.bf16.msrb.mxu0 %v3895_v22  ;;  %v3885_v61 = vld [vmem:[%s4888_s2 + $0x188] sm:$0xff]  ;;  %v1384_v43 = vsel %vm4034_vm2, %v1379_v8, %v1383_v31  ;;  %v4568_v44 = vld [vmem:[#allocation2 + $0x10] sm:$0xe]  ;;  %2165 = vmatpush.bf16.msra.mxu1 %v3864_v5  ;;  %v1277_v46 = vld [vmem:[#allocation2 + $0x40] sm:$0xf] }
 0x110   : > { %v1207_v12 = vor.u32 %v1205_v55, %v1204_v62  ;;  %v1208_v3 = vrot.slane %v1204_v62, 4  ;;  %v1085_v13 = vmax.f32 %v1077_v0, 0.0  ;;  %v1388_v15 = vrot.slane %v1386_v2, 4  ;;  %2339 = vmatpush.bf16.msrb.mxu2 %v3872_v35  ;;  %v2504_v54 = vld [vmem:[#allocation2 + $0x10] sm:$0xf]  ;;  %2473 = vmatpush.bf16.msrb.mxu3 %v3885_v61  ;;  %v3893_v57 = vld [vmem:[%s4888_s2 + $0x1c8] sm:$0xff] }
 0x111   : > { %v1724_v16 = vpack.c.b16 %v1719_v59, %v1718_v7  ;;  %v1391_v25 = vrot.slane %v1389_v9, 5  ;;  %v1397_v27 = vrot.slane %v1395_v14, 5  ;;  %v1280_v55 = vld [vmem:[#allocation2 + $0x44] sm:$0x1]  ;;  %v1448_v56 = vunpack.c.l.b16 %v1384_v43  ;;  %v4579_v4 = vld [vmem:[#allocation2 + $0x14] sm:$0x1] }
 0x112   : > { %v1272_v24 = vsel %vm4372_vm9, %v1207_v12, %v1271_v63  ;;  %v1275_v21 = vsel %vm4245_vm6, %v1208_v3, %v1274_v6  ;;  %v1093_v23 = vpack.c.bf16 %v1085_v13, %v1085_v13  ;;  %v3854_v30 = vld [vmem:[#allocation2 + $0x2c] sm:$0xf0]  ;;  %v3884_v62 = vld [vmem:[%s4888_s2 + $0x180] sm:$0xff]  ;;  %v3550_v7 = vrot.slane %v4568_v44, 9  ;;  %v2506_v59 = vld [vmem:[#allocation2 + $0x18] sm:$0xf] }
 0x113   : > { %v1644_v32 = vld [vmem:[#allocation2 + $0x30] sm:$0xe]  ;;  %1273 = vst [vmem:[#allocation2 + $0x38] sm:$0xf] %v1272_v24  ;;  %v3464_v36 = vor.u32 %v3854_v30, %v3463_v17  ;;  %v1392_v38 = vor.u32 %v1391_v25, %v1388_v15  ;;  %v4558_v39 = vld [vmem:[#allocation2 + $0x34] sm:$0x1]  ;;  %2718 = vmatpush.bf16.msrb.mxu0 %v3894_v41 }
 0x114   : > { %1276 = vst [vmem:[#allocation2 + $0x3c] sm:$0x1] %v1275_v21  ;;  %v1210_v42 = vshrl.u32 %v1093_v23, 16  ;;  %v1213_v34 = vshll.u32 %v1093_v23, 16  ;;  %v3387_v48 = vrot.slane %v1644_v32, 9  ;;  %v1691_v51 = vrot.slane %v4558_v39, 5  ;;  %2474 = vmatpush.bf16.msrb.mxu3 %v3884_v62 }
 0x115   : > { %1796 = vmatmul.bf16.gmra.mxu3 %v1724_v16  ;;  %1930 = vmatmul.bf16.gmra.mxu0 %v3464_v36  ;;  %v1393_v47 = vrot.slane %v1392_v38, 4  ;;  %v1289_v50 = vld [vmem:[#allocation2 + $0x30] sm:$0xf]  ;;  %v2521_v8 = vshrl.u32 %v2504_v54, 16  ;;  %v2524_v9 = vshll.u32 %v2504_v54, 16  ;;  %v2225_v21 = vrot.slane %v4579_v4, 5 }
 0x116   : > { %v1212_v29 = vrot.slane %v1210_v42, 7  ;;  %v1400_v52 = vshrl.u32 %v1289_v50, 16  ;;  %v1403_v53 = vshll.u32 %v1289_v50, 16  ;;  %v3347_v3 = vld [vmem:[#allocation2 + $0x30] sm:$0xf]  ;;  %v1692_v5 = vsel %vm4387_vm12, %v3387_v48, %v1691_v51  ;;  %v3907_v36 = vld [vmem:[%s4888_s2 + $0x238] sm:$0xff] }
 0x117   : > { %v1398_v19 = vsel %vm4034_vm2, %v1393_v47, %v1397_v27  ;;  %2719 = vmatpush.bf16.msrb.mxu0 %v3893_v57  ;;  %v1720_v23 = vunpack.c.l.b16 %v1692_v5  ;;  %v1409_v30 = vshll.u32 %v4558_v39, 16  ;;  %v4593_v35 = vld [vmem:[#allocation2 + $0xc] sm:$0x1]  ;;  %v2195_v41 = vld [vmem:[#allocation2 + $0x8] sm:$0xe]  ;;  %v2523_v61 = vrot.slane %v2521_v8, 4  ;;  %2887 = vmatpush.bf16.msrb.mxu1 %v3907_v36 }
 0x118   : > { %v1215_v63 = vor.u32 %v1213_v34, %v1212_v29  ;;  %v1216_v0 = vrot.slane %v1212_v29, 4  ;;  %v1449_v1 = vunpack.c.l.b16 %v1398_v19  ;;  %v1402_v2 = vrot.slane %v1400_v52, 4  ;;  %v3906_v39 = vld [vmem:[%s4888_s2 + $0x230] sm:$0xff]  ;;  %v4606_v19 = vld [vmem:[#allocation2 + $0x1c] sm:$0x1] }
 0x119   : > { %v1405_v6 = vrot.slane %v1403_v53, 5  ;;  %v2526_v42 = vrot.slane %v2524_v9, 5  ;;  %v2535_v43 = vshrl.u32 %v2506_v59, 16  ;;  %v4603_v48 = vld [vmem:[#allocation2 + $0x14] sm:$0x1]  ;;  %v2538_v29 = vshll.u32 %v2506_v59, 16 }
 0x11a   : > { %v1278_v22 = vsel %vm4372_vm9, %v1215_v63, %v1277_v46  ;;  %v1281_v10 = vsel %vm4245_vm6, %v1216_v0, %v1280_v55  ;;  %v1454_v12 = vpack.c.b16 %v1449_v1, %v1448_v56  ;;  %v3827_v13 = vld [vmem:[#allocation2 + $0x34] sm:$0xf0]  ;;  %v1951_v51 = vld [vmem:[#allocation2 + $0x10] sm:$0xf]  ;;  %v3549_v54 = vrot.slane %v2195_v41, 9 }
 0x11b   : > { %v1645_v15 = vld [vmem:[#allocation2 + $0x38] sm:$0xe]  ;;  %1279 = vst [vmem:[#allocation2 + $0x40] sm:$0xf] %v1278_v22  ;;  %v3348_v16 = vor.u32 %v3827_v13, %v3347_v3  ;;  %v1314_v17 = vld [vmem:[#allocation2 + $0x3c] sm:$0x1]  ;;  %v1406_v24 = vor.u32 %v1405_v6, %v1402_v2  ;;  %2720 = vmatpush.bf16.msrb.mxu0 %v3892_v58  ;;  %v2226_v0 = vsel %vm4387_vm12, %v3550_v7, %v2225_v21 }
 0x11c   : > { %v3388_v25 = vrot.slane %v1645_v15, 9  ;;  %1282 = vst [vmem:[#allocation2 + $0x44] sm:$0x1] %v1281_v10  ;;  %v1695_v28 = vrot.slane %v1314_v17, 5  ;;  %v1290_v14 = vld [vmem:[#allocation2 + $0x38] sm:$0xf]  ;;  %v2527_v1 = vor.u32 %v2526_v42, %v2523_v61  ;;  %2888 = vmatpush.bf16.msrb.mxu1 %v3906_v39 }
 0x11d   : > { %1526 = vmatmul.bf16.gmra.mxu1 %v1454_v12  ;;  %1632 = vmatmul.bf16.gmra.mxu2 %v3348_v16  ;;  %v1414_v31 = vshrl.u32 %v1290_v14, 16  ;;  %v1417_v32 = vshll.u32 %v1290_v14, 16  ;;  %v1423_v47 = vshll.u32 %v1314_v17, 16  ;;  %v1407_v27 = vrot.slane %v1406_v24, 4  ;;  %v1949_v56 = vld [vmem:[#allocation2 + $0x8] sm:$0xf] }
 0x11e   : > { %v1696_v38 = vsel %vm4387_vm12, %v3388_v25, %v1695_v28  ;;  %v2537_v50 = vrot.slane %v2535_v43, 4  ;;  %v2221_v55 = vrot.slane %v4593_v35, 5  ;;  %v3467_v57 = vld [vmem:[#allocation2 + $0x38] sm:$0xf]  ;;  %v1411_v63 = vrot.slane %v1409_v30, 5 }
 0x11f   : > { %v1721_v44 = vunpack.c.l.b16 %v1696_v38  ;;  %v1416_v34 = vrot.slane %v1414_v31, 4  ;;  %v1419_v46 = vrot.slane %v1417_v32, 5  ;;  %v2540_v2 = vrot.slane %v2538_v29, 5  ;;  %v2197_v41 = vld [vmem:[#allocation2 + $0x18] sm:$0xe] }
 0x120   : > { %v1425_v59 = vrot.slane %v1423_v47, 5  ;;  %v1980_v9 = vshrl.u32 %v1951_v51, 16  ;;  %v1412_v22 = vsel %vm4034_vm2, %v1407_v27, %v1411_v63  ;;  %v1966_v12 = vshrl.u32 %v1949_v56, 16  ;;  %v2510_v61 = vld [vmem:[#allocation2 + $0x28] sm:$0xf] }
 0x121   : > { %v1725_v52 = vpack.c.b16 %v1721_v44, %v1720_v23  ;;  %v1420_v53 = vor.u32 %v1419_v46, %v1416_v34  ;;  %v2541_v10 = vor.u32 %v2540_v2, %v2537_v50  ;;  %v1969_v3 = vshll.u32 %v1949_v56, 16  ;;  %v4618_v43 = vld [vmem:[#allocation2 + $0x1c] sm:$0x1]  ;;  %v2508_v44 = vld [vmem:[#allocation2 + $0x20] sm:$0xf] }
 0x122   : > { %v3855_v62 = vld [vmem:[#allocation2 + $0x3c] sm:$0xf0]  ;;  %v2530_v7 = vshll.u32 %v4603_v48, 16  ;;  %v2544_v15 = vshll.u32 %v4606_v19, 16  ;;  %v1983_v5 = vshll.u32 %v1951_v51, 16  ;;  %v2222_v17 = vsel %vm4387_vm12, %v3549_v54, %v2221_v55 }
 0x123   : > { %v3468_v6 = vor.u32 %v3855_v62, %v3467_v57  ;;  %v1421_v8 = vrot.slane %v1420_v53, 4  ;;  %v2269_v25 = vunpack.c.l.b16 %v2226_v0  ;;  %v1982_v58 = vrot.slane %v1980_v9, 4  ;;  %v4625_v27 = vld [vmem:[#allocation2 + $0x24] sm:$0x1]  ;;  %v2198_v50 = vld [vmem:[#allocation2 + $0x20] sm:$0xe] }
 0x124   : > { %v1450_v28 = vunpack.c.l.b16 %v1412_v22  ;;  %v2528_v14 = vrot.slane %v2527_v1, 4  ;;  %v2542_v24 = vrot.slane %v2541_v10, 4  ;;  %v1985_v21 = vrot.slane %v1983_v5, 5  ;;  %v3880_v29 = vld [vmem:[#allocation2 + $0x14] sm:$0xf0]  ;;  %v3904_v9 = vld [vmem:[%s4888_s2 + $0x220] sm:$0xff] }
 0x125   : > { %1801 = vmatmul.bf16.gmra.mxu3 %v1725_v52  ;;  %1935 = vmatmul.bf16.gmra.mxu0 %v3468_v6  ;;  %v1426_v13 = vsel %vm4034_vm2, %v1421_v8, %v1425_v59  ;;  %v1968_v23 = vrot.slane %v1966_v12, 4  ;;  %v1971_v30 = vrot.slane %v1969_v3, 5  ;;  %v2268_v32 = vunpack.c.l.b16 %v2222_v17  ;;  %v3623_v63 = vld [vmem:[#allocation2 + $0x10] sm:$0xf]  ;;  %v1953_v59 = vld [vmem:[#allocation2 + $0x18] sm:$0xf] }
 0x126   : > { %v1451_v16 = vunpack.c.l.b16 %v1426_v13  ;;  %v2532_v36 = vrot.slane %v2530_v7, 5  ;;  %v2546_v38 = vrot.slane %v2544_v15, 5  ;;  %v1986_v42 = vor.u32 %v1985_v21, %v1982_v58  ;;  %v1955_v13 = vld [vmem:[#allocation2 + $0x20] sm:$0xf] }
 0x127   : > { %v2276_v34 = vpack.c.b16 %v2269_v25, %v2268_v32  ;;  %v1975_v39 = vshll.u32 %v4593_v35, 16  ;;  %v1972_v51 = vor.u32 %v1971_v30, %v1968_v23  ;;  %v1989_v52 = vshll.u32 %v4579_v4, 16  ;;  %v3905_v35 = vld [vmem:[%s4888_s2 + $0x228] sm:$0xff] }
 0x128   : > { %v1455_v31 = vpack.c.b16 %v1451_v16, %v1450_v28  ;;  %v2533_v46 = vsel %vm4034_vm2, %v2528_v14, %v2532_v36  ;;  %v2547_v47 = vsel %vm4034_vm2, %v2542_v24, %v2546_v38  ;;  %v3551_v53 = vrot.slane %v2197_v41, 9  ;;  %2889 = vmatpush.bf16.msrb.mxu1 %v3905_v35  ;;  %v4642_v28 = vld [vmem:[#allocation2 + $0x2c] sm:$0x1]  ;;  %v4644_v24 = vld [vmem:[#allocation2 + $0x24] sm:$0x1] }
 0x129   : > { %v2563_v54 = vshrl.u32 %v2510_v61, 16  ;;  %v2229_v55 = vrot.slane %v4618_v43, 5  ;;  %v2549_v56 = vshrl.u32 %v2508_v44, 16  ;;  %v2552_v57 = vshll.u32 %v2508_v44, 16 }
 0x12a   : > { %v2566_v62 = vshll.u32 %v2510_v61, 16  ;;  %v2650_v0 = vunpack.c.l.b16 %v2547_v47  ;;  %v1987_v1 = vrot.slane %v1986_v42, 4  ;;  %v3552_v2 = vrot.slane %v2198_v50, 9  ;;  %v2512_v61 = vld [vmem:[#allocation2 + $0x30] sm:$0xf] }
 0x12b   : > { %v2233_v6 = vrot.slane %v4625_v27, 5  ;;  %v2565_v4 = vrot.slane %v2563_v54, 4  ;;  %v3624_v22 = vor.u32 %v3880_v29, %v3623_v63  ;;  %v2649_v10 = vunpack.c.l.b16 %v2533_v46  ;;  %v4652_v54 = vld [vmem:[#allocation2 + $0x20] sm:$0xf] }
 0x12c   : > { %v2568_v8 = vrot.slane %v2566_v62, 5  ;;  %v1977_v12 = vrot.slane %v1975_v39, 5  ;;  %v1991_v3 = vrot.slane %v1989_v52, 5  ;;  %v1973_v7 = vrot.slane %v1972_v51, 4  ;;  %2890 = vmatpush.bf16.msrb.mxu1 %v3904_v9  ;;  %v2514_v52 = vld [vmem:[#allocation2 + $0x38] sm:$0xf] }
 0x12d   : > { %1531 = vmatmul.bf16.gmra.mxu1 %v1455_v31  ;;  %2340 = vmatmul.bf16.vlgmr.msrb.gmra.mxu2 %v2276_v34  ;;  %v2230_v15 = vsel %vm4387_vm12, %v3551_v53, %v2229_v55  ;;  %v2551_v5 = vrot.slane %v2549_v56, 4  ;;  %v2554_v16 = vrot.slane %v2552_v57, 5  ;;  %v2657_v17 = vpack.c.b16 %v2650_v0, %v2649_v10  ;;  %v4649_v34 = vld [vmem:[#allocation2 + $0x24] sm:$0xf0]  ;;  %v4656_v0 = vld [vmem:[#allocation2 + $0x2c] sm:$0x1] }
 0x12e   : > { %v1992_v25 = vsel %vm4034_vm2, %v1987_v1, %v1991_v3  ;;  %v2234_v58 = vsel %vm4387_vm12, %v3552_v2, %v2233_v6  ;;  %v1994_v14 = vshrl.u32 %v1953_v59, 16  ;;  %v2569_v21 = vor.u32 %v2568_v8, %v2565_v4  ;;  %v2199_v6 = vld [vmem:[#allocation2 + $0x28] sm:$0xe] }
 0x12f   : > { %v1997_v23 = vshll.u32 %v1953_v59, 16  ;;  %v2008_v30 = vshrl.u32 %v1955_v13, 16  ;;  %v2011_v31 = vshll.u32 %v1955_v13, 16  ;;  %v1978_v32 = vsel %vm4034_vm2, %v1973_v7, %v1977_v12  ;;  %v2200_v12 = vld [vmem:[#allocation2 + $0x30] sm:$0xe] }
 0x130   : > { %v2271_v36 = vunpack.c.l.b16 %v2234_v58  ;;  %v2555_v38 = vor.u32 %v2554_v16, %v2551_v5  ;;  %v2572_v41 = vshll.u32 %v4642_v28, 16  ;;  %v2095_v42 = vunpack.c.l.b16 %v1992_v25  ;;  %v1957_v3 = vld [vmem:[#allocation2 + $0x28] sm:$0xf]  ;;  %v1959_v13 = vld [vmem:[#allocation2 + $0x30] sm:$0xf] }
 0x131   : > { %v2270_v44 = vunpack.c.l.b16 %v2230_v15  ;;  %v2558_v46 = vshll.u32 %v4644_v24, 16  ;;  %v1996_v47 = vrot.slane %v1994_v14, 4  ;;  %v2570_v39 = vrot.slane %v2569_v21, 4  ;;  %v4661_v7 = vld [vmem:[#allocation2 + $0x34] sm:$0x1] }
 0x132   : > { %v1999_v50 = vrot.slane %v1997_v23, 5  ;;  %v2010_v29 = vrot.slane %v2008_v30, 4  ;;  %v2013_v51 = vrot.slane %v2011_v31, 5  ;;  %v2094_v53 = vunpack.c.l.b16 %v1978_v32  ;;  %v4667_v21 = vld [vmem:[#allocation2 + $0x3c] sm:$0x1] }
 0x133   : > { %v2577_v55 = vshrl.u32 %v2512_v61, 16  ;;  %v2580_v56 = vshll.u32 %v2512_v61, 16  ;;  %v2277_v57 = vpack.c.b16 %v2271_v36, %v2270_v44  ;;  %v3628_v62 = vor.u32 %v4649_v34, %v4652_v54  ;;  %v3903_v23 = vld [vmem:[%s4888_s2 + $0x218] sm:$0xff]  ;;  %v4673_v44 = vld [vmem:[#allocation2 + $0x34] sm:$0x1] }
 0x134   : > { %v2556_v35 = vrot.slane %v2555_v38, 4  ;;  %v2574_v63 = vrot.slane %v2572_v41, 5  ;;  %v2102_v1 = vpack.c.b16 %v2095_v42, %v2094_v53  ;;  %v2560_v2 = vrot.slane %v2558_v46, 5  ;;  %2891 = vmatpush.bf16.msrb.mxu1 %v3903_v23 }
 0x135   : > { %2475 = vmatmul.bf16.vlgmr.msrb.gmra.mxu3 %v3624_v22  ;;  %2721 = vmatmul.bf16.vlgmr.msrb.gmra.mxu0 %v2657_v17  ;;  %v2591_v4 = vshrl.u32 %v2514_v52, 16  ;;  %v2594_v8 = vshll.u32 %v2514_v52, 16  ;;  %v2000_v9 = vor.u32 %v1999_v50, %v1996_v47  ;;  %v2003_v22 = vshll.u32 %v4618_v43, 16 }
 0x136   : > { %v2575_v59 = vsel %vm4034_vm2, %v2570_v39, %v2574_v63  ;;  %v2014_v10 = vor.u32 %v2013_v51, %v2010_v29  ;;  %v2579_v15 = vrot.slane %v2577_v55, 4  ;;  %v2582_v5 = vrot.slane %v2580_v56, 5 }
 0x137   : > { %v2593_v16 = vrot.slane %v2591_v4, 4  ;;  %v2596_v17 = vrot.slane %v2594_v8, 5  ;;  %v2561_v25 = vsel %vm4034_vm2, %v2556_v35, %v2560_v2  ;;  %v2017_v58 = vshll.u32 %v4625_v27, 16  ;;  %v3902_v27 = vld [vmem:[%s4888_s2 + $0x210] sm:$0xff] }
 0x138   : > { %v3553_v14 = vrot.slane %v2199_v6, 9  ;;  %v2237_v43 = vrot.slane %v4656_v0, 5  ;;  %v3554_v30 = vrot.slane %v2200_v12, 9  ;;  %v2036_v32 = vshrl.u32 %v1959_v13, 16  ;;  %2892 = vmatpush.bf16.msrb.mxu1 %v3902_v27 }
 0x139   : > { %v2597_v31 = vor.u32 %v2596_v17, %v2593_v16  ;;  %v2039_v36 = vshll.u32 %v1959_v13, 16  ;;  %v2652_v38 = vunpack.c.l.b16 %v2575_v59  ;;  %v2001_v41 = vrot.slane %v2000_v9, 4  ;;  %v4688_v59 = vld [vmem:[#allocation2 + $0x3c] sm:$0x1]  ;;  %v2201_v9 = vld [vmem:[#allocation2 + $0x38] sm:$0xe] }
 0x13a   : > { %v2015_v61 = vrot.slane %v2014_v10, 4  ;;  %v2241_v42 = vrot.slane %v4661_v7, 5  ;;  %v2583_v34 = vor.u32 %v2582_v5, %v2579_v15  ;;  %v2600_v46 = vshll.u32 %v4667_v21, 16  ;;  %v4692_v13 = vld [vmem:[#allocation2 + $0x44] sm:$0x1] }
 0x13b   : > { %v2022_v47 = vshrl.u32 %v1957_v3, 16  ;;  %v2025_v39 = vshll.u32 %v1957_v3, 16  ;;  %v2651_v50 = vunpack.c.l.b16 %v2561_v25  ;;  %v2005_v29 = vrot.slane %v2003_v22, 5  ;;  %v2202_v15 = vld [vmem:[#allocation2 + $0x40] sm:$0xe] }
 0x13c   : > { %v2019_v51 = vrot.slane %v2017_v58, 5  ;;  %v2238_v52 = vsel %vm4387_vm12, %v3553_v14, %v2237_v43  ;;  %v2586_v53 = vshll.u32 %v4673_v44, 16  ;;  %v2598_v54 = vrot.slane %v2597_v31, 4  ;;  %v2516_v58 = vld [vmem:[#allocation2 + $0x40] sm:$0xf] }
 0x13d   : > { %2166 = vmatmul.bf16.vlgmr.msra.gmra.mxu1 %v2102_v1  ;;  %2345 = vmatmul.bf16.gmra.mxu2 %v2277_v57  ;;  %v2038_v55 = vrot.slane %v2036_v32, 4  ;;  %v2041_v56 = vrot.slane %v2039_v36, 5  ;;  %v2658_v57 = vpack.c.b16 %v2652_v38, %v2651_v50  ;;  %v2006_v35 = vsel %vm4034_vm2, %v2001_v41, %v2005_v29  ;;  %v2750_v31 = vld [vmem:[#allocation2 + $0x10] sm:$0xe]  ;;  %v4698_v32 = vld [vmem:[#allocation2 + $0x34] sm:$0xf0] }
 0x13e   : > { %v2020_v63 = vsel %vm4034_vm2, %v2015_v61, %v2019_v51  ;;  %v2242_v1 = vsel %vm4387_vm12, %v3554_v30, %v2241_v42  ;;  %v2584_v2 = vrot.slane %v2583_v34, 4  ;;  %v2602_v6 = vrot.slane %v2600_v46, 5  ;;  %v2518_v30 = vld [vmem:[#allocation2 + $0x48] sm:$0xf] }
 0x13f   : > { %v2024_v4 = vrot.slane %v2022_v47, 4  ;;  %v2027_v8 = vrot.slane %v2025_v39, 5  ;;  %v2273_v22 = vunpack.c.l.b16 %v2242_v1  ;;  %v2588_v10 = vrot.slane %v2586_v53, 5  ;;  %v3631_v47 = vld [vmem:[#allocation2 + $0x30] sm:$0xf] }
 0x140   : > { %v2603_v12 = vsel %vm4034_vm2, %v2598_v54, %v2602_v6  ;;  %v2042_v3 = vor.u32 %v2041_v56, %v2038_v55  ;;  %v2096_v5 = vunpack.c.l.b16 %v2006_v35  ;;  %v2097_v16 = vunpack.c.l.b16 %v2020_v63  ;;  %v2751_v53 = vld [vmem:[#allocation2 + $0x18] sm:$0xe]  ;;  %v3901_v63 = vld [vmem:[%s4888_s2 + $0x208] sm:$0xff]  ;;  %v2752_v1 = vld [vmem:[#allocation2 + $0x20] sm:$0xe] }
 0x141   : > { %v2272_v17 = vunpack.c.l.b16 %v2238_v52  ;;  %v2031_v25 = vshll.u32 %v4656_v0, 16  ;;  %v2028_v14 = vor.u32 %v2027_v8, %v2024_v4  ;;  %v2045_v43 = vshll.u32 %v4661_v7, 16  ;;  %v4721_v6 = vld [vmem:[#allocation2 + $0x44] sm:$0x1]  ;;  %2893 = vmatpush.bf16.msrb.mxu1 %v3901_v63 }
 0x142   : > { %v3555_v23 = vrot.slane %v2201_v9, 9  ;;  %v4700_v36 = vunpack.c.l.b16 %v2603_v12  ;;  %v2245_v38 = vrot.slane %v4688_v59, 5  ;;  %v3556_v41 = vrot.slane %v2202_v15, 9 }
 0x143   : > { %v2249_v61 = vrot.slane %v4692_v13, 5  ;;  %v2278_v0 = vpack.c.b16 %v2273_v22, %v2272_v17  ;;  %v2043_v42 = vrot.slane %v2042_v3, 4  ;;  %v2605_v27 = vshrl.u32 %v2516_v58, 16  ;;  %v4724_v22 = vld [vmem:[#allocation2 + $0x4c] sm:$0x1] }
 0x144   : > { %v2608_v34 = vshll.u32 %v2516_v58, 16  ;;  %v2103_v46 = vpack.c.b16 %v2097_v16, %v2096_v5  ;;  %v2619_v7 = vshrl.u32 %v2518_v30, 16  ;;  %v2622_v50 = vshll.u32 %v2518_v30, 16  ;;  %v3900_v16 = vld [vmem:[%s4888_s2 + $0x200] sm:$0xff]  ;;  %v2754_v30 = vld [vmem:[#allocation2 + $0x30] sm:$0xe] }
 0x145   : > { %2480 = vmatmul.bf16.gmra.mxu3 %v3628_v62  ;;  %2726 = vmatmul.bf16.gmra.mxu0 %v2658_v57  ;;  %v2589_v62 = vsel %vm4034_vm2, %v2584_v2, %v2588_v10  ;;  %v3632_v29 = vor.u32 %v4698_v32, %v3631_v47  ;;  %v4705_v51 = vrot.slane %v2028_v14, 4  ;;  %v2047_v52 = vrot.slane %v2045_v43, 5  ;;  %v1963_v43 = vld [vmem:[#allocation2 + $0x40] sm:$0xf] }
 0x146   : > { %v2653_v39 = vunpack.c.l.b16 %v2589_v62  ;;  %v3717_v54 = vrot.slane %v2750_v31, 9  ;;  %v2033_v56 = vrot.slane %v2031_v25, 5  ;;  %v4710_v57 = vsel %vm4387_vm12, %v3555_v23, %v2245_v38  ;;  %2894 = vmatpush.bf16.msrb.mxu1 %v3900_v16 }
 0x147   : > { %v4714_v35 = vsel %vm4387_vm12, %v3556_v41, %v2249_v61  ;;  %v2048_v2 = vsel %vm4034_vm2, %v2043_v42, %v2047_v52  ;;  %v2607_v4 = vrot.slane %v2605_v27, 4  ;;  %v2610_v8 = vrot.slane %v2608_v34, 5 }
 0x148   : > { %v2659_v55 = vpack.c.b16 %v4700_v36, %v2653_v39  ;;  %v2776_v9 = vrot.slane %v4603_v48, 5  ;;  %v2621_v10 = vrot.slane %v2619_v7, 4  ;;  %v2624_v12 = vrot.slane %v2622_v50, 5  ;;  %v2753_v48 = vld [vmem:[#allocation2 + $0x28] sm:$0xe] }
 0x149   : > { %v3718_v3 = vrot.slane %v2751_v53, 9  ;;  %v2780_v15 = vrot.slane %v4606_v19, 5  ;;  %v2034_v5 = vsel %vm4034_vm2, %v4705_v51, %v2033_v56  ;;  %v3719_v25 = vrot.slane %v2752_v1, 9  ;;  %v1961_v36 = vld [vmem:[#allocation2 + $0x38] sm:$0xf] }
 0x14a   : > { %v2777_v17 = vsel %vm4387_vm12, %v3717_v54, %v2776_v9  ;;  %v2784_v58 = vrot.slane %v4644_v24, 5  ;;  %v2099_v62 = vunpack.c.l.b16 %v2048_v2  ;;  %v2275_v14 = vunpack.c.l.b16 %v4714_v35  ;;  %v2755_v35 = vld [vmem:[#allocation2 + $0x38] sm:$0xe] }
 0x14b   : > { %v2614_v19 = vshll.u32 %v4721_v6, 16  ;;  %v2781_v23 = vsel %vm4387_vm12, %v3718_v3, %v2780_v15  ;;  %v2611_v31 = vor.u32 %v2610_v8, %v2607_v4  ;;  %v2628_v32 = vshll.u32 %v4724_v22, 16 }
 0x14c   : > { %v2823_v38 = vunpack.c.l.b16 %v2777_v17  ;;  %v2824_v41 = vunpack.c.l.b16 %v2781_v23  ;;  %v2625_v61 = vor.u32 %v2624_v12, %v2621_v10  ;;  %v2785_v24 = vsel %vm4387_vm12, %v3719_v25, %v2784_v58 }
 0x14d   : > { %2171 = vmatmul.bf16.gmra.mxu1 %v2103_v46  ;;  %2350 = vmatmul.bf16.gmra.mxu2 %v2278_v0  ;;  %v3720_v0 = vrot.slane %v2753_v48, 9  ;;  %v2788_v42 = vrot.slane %v4642_v28, 5  ;;  %v2064_v27 = vshrl.u32 %v1963_v43, 16  ;;  %v2067_v34 = vshll.u32 %v1963_v43, 16 }
 0x14e   : > { %v4744_v46 = vpack.c.b16 %v2824_v41, %v2823_v38  ;;  %v3721_v47 = vrot.slane %v2754_v30, 9  ;;  %v2050_v39 = vshrl.u32 %v1961_v36, 16  ;;  %v2053_v7 = vshll.u32 %v1961_v36, 16  ;;  %v2756_v30 = vld [vmem:[#allocation2 + $0x40] sm:$0xe] }
 0x14f   : > { %v2789_v50 = vsel %vm4387_vm12, %v3720_v0, %v2788_v42  ;;  %v2792_v51 = vrot.slane %v4673_v44, 5  ;;  %v2612_v52 = vrot.slane %v2611_v31, 4  ;;  %v2630_v53 = vrot.slane %v2628_v32, 5  ;;  %v2757_v31 = vld [vmem:[#allocation2 + $0x48] sm:$0xe] }
 0x150   : > { %v2825_v54 = vunpack.c.l.b16 %v2785_v24  ;;  %v2826_v56 = vunpack.c.l.b16 %v2789_v50  ;;  %v2626_v28 = vrot.slane %v2625_v61, 4  ;;  %v3722_v1 = vrot.slane %v2755_v35, 9  ;;  %v3635_v38 = vld [vmem:[#allocation2 + $0x40] sm:$0xf]  ;;  %v3883_v41 = vld [vmem:[#allocation2 + $0x44] sm:$0xf0] }
 0x151   : > { %v2793_v63 = vsel %vm4387_vm12, %v3721_v47, %v2792_v51  ;;  %v2069_v2 = vrot.slane %v2067_v34, 5  ;;  %v2098_v8 = vunpack.c.l.b16 %v2034_v5  ;;  %v2274_v9 = vunpack.c.l.b16 %v4710_v57 }
 0x152   : > { %v2832_v4 = vpack.c.b16 %v2826_v56, %v2825_v54  ;;  %v2616_v10 = vrot.slane %v2614_v19, 5  ;;  %v2052_v12 = vrot.slane %v2050_v39, 4  ;;  %v2055_v3 = vrot.slane %v2053_v7, 5 }
 0x153   : > { %v2827_v15 = vunpack.c.l.b16 %v2793_v63  ;;  %v2104_v17 = vpack.c.b16 %v2099_v62, %v2098_v8  ;;  %v2279_v48 = vpack.c.b16 %v2275_v14, %v2274_v9  ;;  %v2073_v23 = vshll.u32 %v4692_v13, 16 }
 0x154   : > { %v2617_v25 = vsel %vm4034_vm2, %v2612_v52, %v2616_v10  ;;  %v2056_v43 = vor.u32 %v2055_v3, %v2052_v12  ;;  %v3723_v32 = vrot.slane %v2756_v30, 9  ;;  %v2800_v62 = vrot.slane %v4721_v6, 5 }
 0x155   : > { %2485 = vmatmul.bf16.gmra.mxu3 %v3632_v29  ;;  %2731 = vmatmul.bf16.gmra.mxu0 %v2659_v55  ;;  %v2796_v29 = vrot.slane %v4667_v21, 5  ;;  %v2066_v55 = vrot.slane %v2064_v27, 4  ;;  %v2631_v21 = vsel %vm4034_vm2, %v2626_v28, %v2630_v53  ;;  %v2655_v57 = vunpack.c.l.b16 %v2617_v25 }
 0x156   : > { %v2656_v19 = vunpack.c.l.b16 %v2631_v21  ;;  %v3724_v14 = vrot.slane %v2757_v31, 9  ;;  %v2804_v36 = vrot.slane %v4724_v22, 5  ;;  %v2059_v61 = vshll.u32 %v4688_v59, 16 }
 0x157   : > { %v2797_v44 = vsel %vm4387_vm12, %v3722_v1, %v2796_v29  ;;  %v2070_v58 = vor.u32 %v2069_v2, %v2066_v55  ;;  %v2801_v0 = vsel %vm4387_vm12, %v3723_v32, %v2800_v62  ;;  %v2057_v13 = vrot.slane %v2056_v43, 4 }
 0x158   : > { %v2828_v16 = vunpack.c.l.b16 %v2797_v44  ;;  %v2805_v42 = vsel %vm4387_vm12, %v3724_v14, %v2804_v36  ;;  %v2075_v27 = vrot.slane %v2073_v23, 5  ;;  %v2829_v34 = vunpack.c.l.b16 %v2801_v0 }
 0x159   : > { %v2071_v24 = vrot.slane %v2070_v58, 4  ;;  %v2830_v47 = vunpack.c.l.b16 %v2805_v42  ;;  %v3636_v39 = vor.u32 %v3883_v41, %v3635_v38  ;;  %v2660_v6 = vpack.c.b16 %v2656_v19, %v2655_v57 }
 0x15a   : > { %v2833_v5 = vpack.c.b16 %v2828_v16, %v2827_v15  ;;  %v2061_v7 = vrot.slane %v2059_v61, 5 }
 0x15b   : > { %v2076_v22 = vsel %vm4034_vm2, %v2071_v24, %v2075_v27  ;;  %v2834_v50 = vpack.c.b16 %v2830_v47, %v2829_v34 }
 0x15c   : > { %v2062_v59 = vsel %vm4034_vm2, %v2057_v13, %v2061_v7  ;;  %v2101_v51 = vunpack.c.l.b16 %v2076_v22 }
 0x15d   : > { %2176 = vmatmul.bf16.gmra.mxu1 %v2104_v17  ;;  %2355 = vmatmul.bf16.gmra.mxu2 %v2279_v48  ;;  %v2100_v52 = vunpack.c.l.b16 %v2062_v59 }
 0x15f   : > { %v2105_v40 = vpack.c.b16 %v2101_v51, %v2100_v52 }
 0x165   : > { %2490 = vmatmul.bf16.gmra.mxu3 %v3636_v39  ;;  %2736 = vmatmul.bf16.gmra.mxu0 %v2660_v6 }
 0x16d   : > { %2181 = vmatmul.bf16.gmra.mxu1 %v2105_v40 }
 0x170   : > { %v1618_v35 = vpop.f32.mrf.mxu2 }
 0x172   : > { %v1921_v1 = vpop.f32.mrf.mxu0 }
 0x176   : > { %v1787_v63 = vpop.f32.mrf.mxu3 }
 0x178   : > { %v1620_v55 = vpop.f32.mrf.mxu2 }
 0x17a   : > { %v1517_v53 = vpop.f32.mrf.mxu1  ;;  %v1923_v8 = vpop.f32.mrf.mxu0 }
 0x17b   : > { %v1619_v61 = vadd.f32 %v1618_v35, %v1517_v53 }
 0x17d   : > { %2895 = vmatmul.bf16.vlgmr.msrb.gmra.mxu1 %v4744_v46  ;;  %v1807_v0 = vadd.f32 %v1787_v63, %v1619_v61 }
 0x17e   : > { %v1789_v33 = vpop.f32.mrf.mxu3 }
 0x17f   : > { %v1941_v34 = vadd.f32 %v1921_v1, %v1807_v0 }
 0x180   : > { %v1623_v9 = vpop.f32.mrf.mxu2 }
 0x182   : > { %v1519_v54 = vpop.f32.mrf.mxu1  ;;  %v1926_v46 = vpop.f32.mrf.mxu0 }
 0x183   : > { %v1621_v27 = vadd.f32 %v1620_v55, %v1519_v54  ;;  %v4817_v54 = vld [vmem:[%s4890_s4 + $0x2] ss:$0 sm:$0xff] }
 0x185   : > { %v1808_v6 = vadd.f32 %v1789_v33, %v1621_v27 }
 0x187   : > { %v1942_v51 = vadd.f32 %v1923_v8, %v1808_v6 }
 0x188   : > { %v1792_v10 = vpop.f32.mrf.mxu3 }
 0x18a   : > { %v1522_v56 = vpop.f32.mrf.mxu1  ;;  %v4782_v15 = vpop.f32.mrf.mxu0 }
 0x18b   : > { %v1624_v59 = vadd.f32 %v1623_v9, %v1522_v56  ;;  %v4822_v56 = vld [vmem:[%s4890_s4 + $0x1] ss:$0 sm:$0xff] }
 0x18d   : > { %2900 = vmatmul.bf16.gmra.mxu1 %v2832_v4  ;;  %v1625_v4 = vpop.f32.mrf.mxu2  ;;  %v1809_v63 = vadd.f32 %v1792_v10, %v1624_v59  ;;  %v350_v10 = vadd.f32 %v4822_v56, %v4215_v11 }
 0x18f   : > { %v1943_v8 = vadd.f32 %v1926_v46, %v1809_v63 }
 0x190   : > { %v1794_v3 = vpop.f32.mrf.mxu3 }
 0x192   : > { %v4772_v28 = vpop.f32.mrf.mxu1  ;;  %v4786_v25 = vpop.f32.mrf.mxu0 }
 0x193   : > { %v1626_v33 = vadd.f32 %v1625_v4, %v4772_v28 }
 0x195   : > { %v1628_v16 = vpop.f32.mrf.mxu2  ;;  %v1810_v0 = vadd.f32 %v1794_v3, %v1626_v33 }
 0x198   : > { %v4784_v48 = vpop.f32.mrf.mxu3 }
 0x19a   : > { %v4774_v29 = vpop.f32.mrf.mxu1  ;;  %v4792_v19 = vpop.f32.mrf.mxu0 }
 0x19b   : > { %v1629_v11 = vadd.f32 %v1628_v16, %v4774_v29 }
 0x19d   : > { %2905 = vmatmul.bf16.gmra.mxu1 %v2833_v5  ;;  %v4788_v58 = vpop.f32.mrf.mxu2 }
 0x1a0   : > { %v4790_v5 = vpop.f32.mrf.mxu3 }
 0x1a2   : > { %v4776_v2 = vpop.f32.mrf.mxu1  ;;  %v4798_v31 = vpop.f32.mrf.mxu0 }
 0x1a5   : > { %v4794_v43 = vpop.f32.mrf.mxu2 }
 0x1a8   : > { %v4796_v23 = vpop.f32.mrf.mxu3 }
 0x1aa   : > { %v4778_v44 = vpop.f32.mrf.mxu1  ;;  %v4806_v36 = vpop.f32.mrf.mxu0 }
 0x1ad   : > { %2910 = vmatmul.bf16.gmra.mxu1 %v2834_v50  ;;  %v4800_v32 = vpop.f32.mrf.mxu2 }
 0x1b0   : > { %v4804_v14 = vpop.f32.mrf.mxu3 }
 0x1b2   : > { %v4780_v12 = vpop.f32.mrf.mxu1  ;;  %v2722_v42 = vpop.f32.mrf.mxu0 }
 0x1b5   : > { %v2341_v38 = vpop.f32.mrf.mxu2 }
 0x1b8   : > { %v2476_v24 = vpop.f32.mrf.mxu3 }
 0x1ba   : > { %v2167_v17 = vpop.f32.mrf.mxu1  ;;  %v2724_v52 = vpop.f32.mrf.mxu0 }
 0x1bb   : > { %v2187_v39 = vadd.f32 %v2167_v17, %v1941_v34 }
 0x1bd   : > { %v2343_v47 = vpop.f32.mrf.mxu2  ;;  %v2361_v22 = vadd.f32 %v2341_v38, %v2187_v39 }
 0x1bf   : > { %v2496_v40 = vadd.f32 %v2476_v24, %v2361_v22  ;;  %v1811_v22 = vadd.f32 %v4784_v48, %v1629_v11 }
 0x1c0   : > { %v2478_v7 = vpop.f32.mrf.mxu3 }
 0x1c1   : > { %v2742_v60 = vadd.f32 %v2722_v42, %v2496_v40 }
 0x1c2   : > { %v2169_v21 = vpop.f32.mrf.mxu1  ;;  %v2727_v24 = vpop.f32.mrf.mxu0 }
 0x1c3   : > { %v2188_v53 = vadd.f32 %v2169_v21, %v1942_v51 }
 0x1c5   : > { %v2346_v35 = vpop.f32.mrf.mxu2  ;;  %v2362_v61 = vadd.f32 %v2343_v47, %v2188_v53  ;;  %v352_v47 = vadd.f32 %v4822_v56, %v4227_v20  ;;  %v1631_v53 = vadd.f32 %v4788_v58, %v4776_v2 }
 0x1c7   : > { %v2497_v17 = vadd.f32 %v2478_v7, %v2362_v61 }
 0x1c8   : > { %v2481_v1 = vpop.f32.mrf.mxu3 }
 0x1c9   : > { %v2743_v46 = vadd.f32 %v2724_v52, %v2497_v17 }
 0x1ca   : > { %v2172_v57 = vpop.f32.mrf.mxu1  ;;  %v2729_v51 = vpop.f32.mrf.mxu0 }
 0x1cb   : > { %v2189_v21 = vadd.f32 %v2172_v57, %v1943_v8  ;;  %v1944_v57 = vadd.f32 %v4782_v15, %v1810_v0 }
 0x1cd   : > { %v2348_v27 = vpop.f32.mrf.mxu2  ;;  %v2363_v28 = vadd.f32 %v2346_v35, %v2189_v21  ;;  %v1945_v35 = vadd.f32 %v4786_v25, %v1811_v22  ;;  %v357_v21 = vadd.f32 %v4822_v56, %v4291_v49 }
 0x1cf   : > { %v2498_v39 = vadd.f32 %v2481_v1, %v2363_v28 }
 0x1d0   : > { %v2483_v3 = vpop.f32.mrf.mxu3 }
 0x1d1   : > { %v2744_v29 = vadd.f32 %v2727_v24, %v2498_v39 }
 0x1d2   : > { %v2174_v30 = vpop.f32.mrf.mxu1  ;;  %v2732_v58 = vpop.f32.mrf.mxu0 }
 0x1d3   : > { %v2190_v6 = vadd.f32 %v2174_v30, %v1944_v57  ;;  %v355_v30 = vadd.f32 %v4822_v56, %v4262_v37 }
 0x1d5   : > { %v2364_v52 = vadd.f32 %v2348_v27, %v2190_v6  ;;  %v2351_v16 = vpop.f32.mrf.mxu2 }
 0x1d7   : > { %v2499_v63 = vadd.f32 %v2483_v3, %v2364_v52 }
 0x1d8   : > { %v2486_v1 = vpop.f32.mrf.mxu3 }
 0x1d9   : > { %v2745_v2 = vadd.f32 %v2729_v51, %v2499_v63 }
 0x1da   : > { %v4802_v62 = vpop.f32.mrf.mxu1 }
 0x1db   : > { %v2191_v48 = vadd.f32 %v4802_v62, %v1945_v35 }
 0x1dd   : > { %v2365_v8 = vadd.f32 %v2351_v16, %v2191_v48  ;;  %v2353_v62 = vpop.f32.mrf.mxu2 }
 0x1e0   : > { %v2488_v27 = vpop.f32.mrf.mxu3 }
 0x1e2   : > { %v4808_v41 = vpop.f32.mrf.mxu1 }
 0x1ea   : > { %v4810_v13 = vpop.f32.mrf.mxu1 }
 0x1f2   : > { %v4812_v50 = vpop.f32.mrf.mxu1 }
 0x1fa   : > { %v2896_v55 = vpop.f32.mrf.mxu1 }
 0x1fb   : > { %v2916_v9 = vadd.f32 %v2896_v55, %v2742_v60  ;;  %v1812_v55 = vadd.f32 %v4790_v5, %v1631_v53 }
 0x1fd   : > { %v2926_v38 = vadd.f32 %v4817_v54, %v2916_v9  ;;  %v1946_v17 = vadd.f32 %v4792_v19, %v1812_v55 }
 0x1ff   : > { %v2934_v42 = vadd.f32 %v2926_v38, %v350_v10  ;;  %v1634_v10 = vadd.f32 %v4794_v43, %v4778_v44  ;;  %v2500_v38 = vadd.f32 %v2486_v1, %v2365_v8  ;;  %v2192_v5 = vadd.f32 %v4808_v41, %v1946_v17 }
 0x200   : > { %v360_v41 = vadd.f32 %v4822_v56, %v4220_v18  ;;  %v362_v18 = vadd.f32 %v4822_v56, %v4241_v26  ;;  %v365_v26 = vadd.f32 %v4822_v56, %v4284_v45 }
 0x201   : > { %v2942_v60 = vmax.f32 %v2934_v42, 0.0  ;;  %v1813_v0 = vadd.f32 %v4796_v23, %v1634_v10  ;;  %v2366_v28 = vadd.f32 %v2353_v62, %v2192_v5  ;;  %v2746_v43 = vadd.f32 %v2732_v58, %v2500_v38 }
 0x202   : > { %v2898_v4 = vpop.f32.mrf.mxu1 }
 0x203   : > { %2950 = vst [vmem:[%s4832_s29] sm:$0xff] %v2942_v60  ;;  %v2917_v34 = vadd.f32 %v2898_v4, %v2743_v46  ;;  %v1636_v60 = vadd.f32 %v4800_v32, %v4780_v12  ;;  %v1947_v46 = vadd.f32 %v4798_v31, %v1813_v0  ;;  %v2734_v4 = vpop.f32.mrf.mxu0  ;;  %v2501_v11 = vadd.f32 %v2488_v27, %v2366_v28  ;;  %v2491_v31 = vpop.f32.mrf.mxu3 }
 0x205   : > { %v2927_v7 = vadd.f32 %v4817_v54, %v2917_v34  ;;  %v2193_v23 = vadd.f32 %v4810_v13, %v1947_v46  ;;  %v2356_v34 = vpop.f32.mrf.mxu2  ;;  %v1814_v3 = vadd.f32 %v4804_v14, %v1636_v60  ;;  %v2747_v32 = vadd.f32 %v2734_v4, %v2501_v11 }
 0x207   : > { %v2935_v59 = vadd.f32 %v2927_v7, %v352_v47  ;;  %v2367_v39 = vadd.f32 %v2356_v34, %v2193_v23  ;;  %v1948_v7 = vadd.f32 %v4806_v36, %v1814_v3 }
 0x209   : > { %v2943_v40 = vmax.f32 %v2935_v59, 0.0  ;;  %v2502_v13 = vadd.f32 %v2491_v31, %v2367_v39  ;;  %v2194_v59 = vadd.f32 %v4812_v50, %v1948_v7 }
 0x20a   : > { %v2901_v15 = vpop.f32.mrf.mxu1 }
 0x20b   : > { %2951 = vst [vmem:[%s4832_s29 + $0x8] sm:$0xff] %v2943_v40  ;;  %v2918_v20 = vadd.f32 %v2901_v15, %v2744_v29  ;;  %v2737_v14 = vpop.f32.mrf.mxu0  ;;  %v2493_v35 = vpop.f32.mrf.mxu3 }
 0x20c   : > { %v2748_v15 = vadd.f32 %v2737_v14, %v2502_v13 }
 0x20d   : > { %v2928_v61 = vadd.f32 %v4817_v54, %v2918_v20  ;;  %v2358_v40 = vpop.f32.mrf.mxu2 }
 0x20e   : > { %v2368_v29 = vadd.f32 %v2358_v40, %v2194_v59 }
 0x20f   : > { %v2936_v33 = vadd.f32 %v2928_v61, %v355_v30 }
 0x210   : > { %v2503_v20 = vadd.f32 %v2493_v35, %v2368_v29 }
 0x211   : > { %v2944_v9 = vmax.f32 %v2936_v33, 0.0  ;;  %v4903_v33 = vld [vmem:[#allocation3_spill] sm:$0xff] }
 0x212   : > { %v2903_v25 = vpop.f32.mrf.mxu1  ;;  %v367_v8 = vadd.f32 %v4822_v56, %v4903_v33 }
 0x213   : > { %2952 = vst [vmem:[%s4832_s29 + $0x10] sm:$0xff] %v2944_v9  ;;  %v2919_v37 = vadd.f32 %v2903_v25, %v2745_v2  ;;  %v2739_v63 = vpop.f32.mrf.mxu0 }
 0x214   : > { %v2749_v61 = vadd.f32 %v2739_v63, %v2503_v20 }
 0x215   : > { %v2929_v24 = vadd.f32 %v4817_v54, %v2919_v37 }
 0x217   : > { %v2937_v42 = vadd.f32 %v2929_v24, %v357_v21 }
 0x219   : > { %v2945_v44 = vmax.f32 %v2937_v42, 0.0 }
 0x21a   : > { %v2906_v19 = vpop.f32.mrf.mxu1 }
 0x21b   : > { %2953 = vst [vmem:[%s4832_s29 + $0x18] sm:$0xff] %v2945_v44  ;;  %v2920_v49 = vadd.f32 %v2906_v19, %v2746_v43 }
 0x21d   : > { %v2930_v57 = vadd.f32 %v4817_v54, %v2920_v49 }
 0x21f   : > { %v2938_v47 = vadd.f32 %v2930_v57, %v360_v41 }
 0x221   : > { %v2946_v12 = vmax.f32 %v2938_v47, 0.0 }
 0x222   : > { %v2908_v6 = vpop.f32.mrf.mxu1 }
 0x223   : > { %2954 = vst [vmem:[%s4832_s29 + $0x20] sm:$0xff] %v2946_v12  ;;  %v2921_v22 = vadd.f32 %v2908_v6, %v2747_v32 }
 0x225   : > { %v2931_v51 = vadd.f32 %v4817_v54, %v2921_v22 }
 0x227   : > { %v2939_v52 = vadd.f32 %v2931_v51, %v362_v18 }
 0x229   : > { %v2947_v16 = vmax.f32 %v2939_v52, 0.0 }
 0x22a   : > { %v2911_v53 = vpop.f32.mrf.mxu1 }
 0x22b   : > { %2955 = vst [vmem:[%s4832_s29 + $0x28] sm:$0xff] %v2947_v16  ;;  %v2922_v36 = vadd.f32 %v2911_v53, %v2748_v15 }
 0x22d   : > { %v2932_v50 = vadd.f32 %v4817_v54, %v2922_v36 }
 0x22f   : > { %v2940_v30 = vadd.f32 %v2932_v50, %v365_v26 }
 0x231   : > { %v2948_v48 = vmax.f32 %v2940_v30, 0.0 }
 0x232   : > { %v2913_v1 = vpop.f32.mrf.mxu1 }
 0x233   : > { %2956 = vst [vmem:[%s4832_s29 + $0x30] sm:$0xff] %v2948_v48  ;;  %v2923_v55 = vadd.f32 %v2913_v1, %v2749_v61 }
 0x235   : > { %v2933_v9 = vadd.f32 %v4817_v54, %v2923_v55 }
 0x237   : > { %v2941_v2 = vadd.f32 %v2933_v9, %v367_v8 }
 0x239   : > { %v2949_v58 = vmax.f32 %v2941_v2, 0.0 }
 0x23b   : > { %2957 = vst [vmem:[%s4832_s29 + $0x38] sm:$0xff] %v2949_v58 }
 0x23c PF: > { %s15_s18 = sadd.s32 1, %s3943_s18  }
 0x23d   : > { %p12_p4 = scmp.ge.s32.totalorder %s15_s18, 4  }
 0x23f   :  { %14 = sbr.rel (!%p12_p4) target bundleno = 1 (0x1), region = 85 }

</bundles_post_ra>
